<compile_context>
chip_gen: v5e
topology: v5e:2x2
jax: 0.10.0
libtpu: 0.0.40
codegen_flags: <defaults>
</compile_context>

<pallas_src>
import functools

import jax
import jax.numpy as jnp
from jax.experimental import pallas as pl
from jax.experimental.pallas import tpu as pltpu


# ---------------------------------------------------------------------------
# Shared body: edge MLP + fused nodes_a MLP for one A tile.
# Returns the (B, E) partial sum over this tile's A rows (f32).
# ---------------------------------------------------------------------------
def _edge_nodes_a_body(edge_ref, na_ref, pb_ref,
                       w1a_ref, w1e_ref, w2_ref, b2_ref,
                       w3_ref, b3_ref, w4_ref, b4_ref,
                       edge_out_ref, na_out_ref):
    ta, B, E2 = edge_ref.shape
    E = E2 // 2
    f32, bf16 = jnp.float32, jnp.bfloat16

    na_bf = na_ref[...]                                                    # (ta, ND) bf16

    # --- edge MLP, Linear1 split along its input: (a | b | edge) -------------
    pa = jnp.dot(na_bf, w1a_ref[...], preferred_element_type=f32)          # (ta, E)
    # Cast the f32 edge tile to bf16 in-kernel (cheap VPU cast) so HBM only sees
    # one f32 read of edge_embeds instead of a separate XLA cast pass.
    edge_bf = edge_ref[...].astype(bf16).reshape(ta * B, E2)               # layout no-op
    pe = jnp.dot(edge_bf, w1e_ref[...], preferred_element_type=f32)        # (ta*B, E)
    # b1 is already folded into pb (hoisted in the wrapper).
    pab = (pa[:, None, :] + pb_ref[...][None, :, :]).reshape(ta * B, E)
    h1 = jnp.maximum(pe + pab, 0.0)                                        # f32, ReLU

    h2 = jnp.dot(h1.astype(bf16), w2_ref[...], preferred_element_type=f32) + b2_ref[...]
    h2 = jnp.maximum(h2, 0.0)                                              # (ta*B, E)
    h2_3d = h2.reshape(ta, B, E)

    # bf16 writeback halves the dominant HBM store traffic / masked vst count.
    edge_out_ref[...] = h2_3d.astype(bf16)
    # TODO(synk): with edge_dim=32 this store is lane-masked (25% lane density); a
    # lane-dense (A, B*edge_dim) output slab would need a minor-dim relayout that
    # Mosaic does not reliably lower for E=32, so the natural (A, B, E) layout stays.

    # --- fused nodes_a MLP (single K = ND+E matmul via lane concat) ----------
    suma = jnp.sum(h2_3d, axis=1)                                          # (ta, E) f32
    xa = jnp.concatenate([na_bf.astype(f32), suma], axis=-1).astype(bf16)  # (ta, ND+E)
    h3 = jnp.maximum(jnp.dot(xa, w3_ref[...], preferred_element_type=f32) + b3_ref[...], 0.0)
    a_out = jnp.dot(h3.astype(bf16), w4_ref[...], preferred_element_type=f32) + b4_ref[...]
    na_out_ref[...] = jnp.maximum(a_out, 0.0)

    return jnp.sum(h2_3d, axis=0)                                          # (B, E) partial


def _node_b_mlp(nb_bf, esum_f32, w3_ref, b3_ref, w4_ref, b4_ref):
    f32, bf16 = jnp.float32, jnp.bfloat16
    xb = jnp.concatenate([nb_bf.astype(f32), esum_f32], axis=-1).astype(bf16)  # (B, ND+E)
    h = jnp.maximum(jnp.dot(xb, w3_ref[...], preferred_element_type=f32) + b3_ref[...], 0.0)
    o = jnp.dot(h.astype(bf16), w4_ref[...], preferred_element_type=f32) + b4_ref[...]
    return jnp.maximum(o, 0.0)


# ---------------------------------------------------------------------------
# Kernel (single-TC parts, v5e/v6e): sequential grid, sumb accumulated in VMEM
# scratch, nodes_b MLP fused into the last grid step.
# ---------------------------------------------------------------------------
def _fused_kernel_seq(edge_ref, na_ref, pb_ref, nb_ref,
                      w1a_ref, w1e_ref, w2_ref, b2_ref,
                      w3_ref, b3_ref, w4_ref, b4_ref,
                      edge_out_ref, na_out_ref, nb_out_ref,
                      sumb_acc):
    i = pl.program_id(0)

    @pl.when(i == 0)
    def _():
        sumb_acc[...] = jnp.zeros_like(sumb_acc)

    sumb_part = _edge_nodes_a_body(edge_ref, na_ref, pb_ref,
                                   w1a_ref, w1e_ref, w2_ref, b2_ref,
                                   w3_ref, b3_ref, w4_ref, b4_ref,
                                   edge_out_ref, na_out_ref)
    sumb_acc[...] += sumb_part

    @pl.when(i == pl.num_programs(0) - 1)
    def _():
        nb_out_ref[...] = _node_b_mlp(nb_ref[...], sumb_acc[...],
                                      w3_ref, b3_ref, w4_ref, b4_ref)


# ---------------------------------------------------------------------------
# Kernel (multi-TC parts, v7x / megacore): parallel grid, per-tile sumb partials.
# ---------------------------------------------------------------------------
def _fused_kernel_par(edge_ref, na_ref, pb_ref,
                      w1a_ref, w1e_ref, w2_ref, b2_ref,
                      w3_ref, b3_ref, w4_ref, b4_ref,
                      edge_out_ref, na_out_ref, sumb_ref):
    sumb_part = _edge_nodes_a_body(edge_ref, na_ref, pb_ref,
                                   w1a_ref, w1e_ref, w2_ref, b2_ref,
                                   w3_ref, b3_ref, w4_ref, b4_ref,
                                   edge_out_ref, na_out_ref)
    sumb_ref[...] = sumb_part[None]


# ---------------------------------------------------------------------------
# Kernel: tiny nodes_b MLP (multi-TC path only).
# ---------------------------------------------------------------------------
def _node_b_kernel(nb_ref, esum_ref, w3_ref, b3_ref, w4_ref, b4_ref, out_ref):
    out_ref[...] = _node_b_mlp(nb_ref[...], esum_ref[...], w3_ref, b3_ref, w4_ref, b4_ref)


_VMEM = pl.BlockSpec(memory_space=pltpu.MemorySpace.VMEM)


# ---------------------------------------------------------------------------
# Per-generation configuration and tile sizing.
# ---------------------------------------------------------------------------
def _tpu_config():
    """Return (multi_tc, tile_budget_bytes, vmem_limit_bytes) for the local TPU."""
    kind = ""
    try:
        kind = jax.devices()[0].device_kind.lower()
    except Exception:
        pass
    if "v7" in kind:                        # 2 TCs/chip, 64 MiB VMEM per TC
        return True, 14 << 20, 32 << 20
    if "v4" in kind or "v5p" in kind:       # megacore (2 TCs), 128 MiB VMEM
        return True, 40 << 20, 96 << 20
    if "v5" in kind or "v6" in kind:        # single TC, 128 MiB VMEM
        return False, 40 << 20, 96 << 20
    return False, 12 << 20, 32 << 20        # unknown part: conservative


def _default_tile_a(A, B, E, ND, vmem_budget_bytes, prefer_multi_tile=False):
    # Pipelined I/O blocks get 2 buffers; in-kernel intermediates exist once.
    io_per_row = (2 * (B * (2 * E) * 4)      # edge in, f32, double buffered
                  + 2 * (B * E * 2)          # edge out, bf16, double buffered
                  + 2 * ND * (2 + 4))        # nodes_a in (bf16) / out (f32)
    interm_per_row = B * (2 * E) * 2 + 4 * B * E * 4   # bf16 cast + pe/pab/h1/h2 (f32)
    per_row = io_per_row + interm_per_row
    cap = max(8, vmem_budget_bytes // max(per_row, 1))
    ta = max(8, min(A, (cap // 8) * 8))
    if prefer_multi_tile and A >= 16:
        # Guarantee >= 2 grid steps so the "parallel" A axis spans both TensorCores.
        ta = min(ta, max(8, ((A // 2) // 8) * 8))
    while ta > 8 and A % ta:
        ta -= 8
    if A % ta:
        ta = A
    return ta


# ---------------------------------------------------------------------------
# Forward wrapper
# ---------------------------------------------------------------------------
def bipartite_mp_forward(edge_embeds, nodes_a, nodes_b, params, *, ta=None, multi_tc=None):
    A, B, E2 = edge_embeds.shape
    E = E2 // 2
    ND = nodes_a.shape[1]
    # TODO(synk): B is never tiled; very large |B| would need a second grid axis
    # (and block-level sumb handling) to stay within VMEM.

    hw_multi_tc, budget, vmem_limit = _tpu_config()
    if multi_tc is None:
        multi_tc = hw_multi_tc
    if ta is None:
        ta = _default_tile_a(A, B, E, ND, budget, prefer_multi_tile=multi_tc)
    assert A % ta == 0 and (ta % 8 == 0 or ta == A), "A tile must divide A (multiple of 8)"
    num_tiles = A // ta

    bf, f32 = jnp.bfloat16, jnp.float32
    edge_f32 = edge_embeds.astype(f32)        # kernel reads f32, casts to bf16 in-kernel
    na_bf = nodes_a.astype(bf)
    nb_bf = nodes_b.astype(bf)

    w1a = params["w1_a"].astype(bf)
    w1e = params["w1_e"].astype(bf)
    w2 = params["w2"].astype(bf)
    w3 = jnp.concatenate([params["w3_n"], params["w3_e"]], axis=0).astype(bf)  # (ND+E, ND)
    w4 = params["w4"].astype(bf)
    b2 = params["b2"].astype(f32)
    b3 = params["b3"].astype(f32)
    b4 = params["b4"].astype(f32)

    # pb is identical on every grid step -> hoist it (tiny matmul) and fold b1 in.
    pb = (jnp.dot(nb_bf, params["w1_b"].astype(bf), preferred_element_type=f32)
          + params["b1"].astype(f32))                                           # (B, E) f32

    w_specs = [
        pl.BlockSpec((ND, E), lambda i: (0, 0)),        # w1_a
        pl.BlockSpec((2 * E, E), lambda i: (0, 0)),     # w1_e
        pl.BlockSpec((E, E), lambda i: (0, 0)),         # w2
        pl.BlockSpec((1, E), lambda i: (0, 0)),         # b2
        pl.BlockSpec((ND + E, ND), lambda i: (0, 0)),   # w3 (merged [w3_n; w3_e])
        pl.BlockSpec((1, ND), lambda i: (0, 0)),        # b3
        pl.BlockSpec((ND, ND), lambda i: (0, 0)),       # w4
        pl.BlockSpec((1, ND), lambda i: (0, 0)),        # b4
    ]
    edge_spec = pl.BlockSpec((ta, B, 2 * E), lambda i: (i, 0, 0))
    na_spec = pl.BlockSpec((ta, ND), lambda i: (i, 0))
    pb_spec = pl.BlockSpec((B, E), lambda i: (0, 0))
    nb_spec = pl.BlockSpec((B, ND), lambda i: (0, 0))
    edge_out_spec = pl.BlockSpec((ta, B, E), lambda i: (i, 0, 0))
    na_out_spec = pl.BlockSpec((ta, ND), lambda i: (i, 0))

    mm_flops = (2 * A * ND * E + 2 * A * B * (2 * E) * E + 2 * A * B * E * E
                + 2 * A * (ND + E) * ND + 2 * A * ND * ND)
    ew_flops = 8 * A * B * E
    nb_flops = 2 * B * (ND + E) * ND + 2 * B * ND * ND
    weight_bytes = (2 * (ND * E + 2 * E * E + E * E + (ND + E) * ND + ND * ND)
                    + 4 * (E + 2 * ND))
    io_bytes = (A * B * 2 * E * 4 + A * B * E * 2 + A * ND * (2 + 4)
                + B * (E * 4 + ND * 2 + ND * 4))

    if not multi_tc:
        # Single-TC (v5e/v6e): scratch-accumulated sumb + nodes_b fused into last step.
        edge_out, na_out, nb_out = pl.pallas_call(
            _fused_kernel_seq,
            grid=(num_tiles,),
            in_specs=[edge_spec, na_spec, pb_spec, nb_spec] + w_specs,
            out_specs=(edge_out_spec, na_out_spec,
                       pl.BlockSpec((B, ND), lambda i: (0, 0))),
            out_shape=(jax.ShapeDtypeStruct((A, B, E), jnp.bfloat16),
                       jax.ShapeDtypeStruct((A, ND), jnp.float32),
                       jax.ShapeDtypeStruct((B, ND), jnp.float32)),
            scratch_shapes=[pltpu.VMEM((B, E), jnp.float32)],
            compiler_params=pltpu.CompilerParams(
                dimension_semantics=("arbitrary",),
                vmem_limit_bytes=vmem_limit),
            cost_estimate=pl.CostEstimate(
                flops=int(mm_flops + ew_flops + nb_flops),
                transcendentals=0,
                bytes_accessed=int(io_bytes + weight_bytes)),
        )(edge_f32, na_bf, pb, nb_bf, w1a, w1e, w2, b2, w3, b3, w4, b4)
        return edge_out, na_out, nb_out

    # Multi-TC (v7x / megacore): parallel A axis with per-tile sumb partials,
    # tiny XLA reduce + tiny second pallas_call for nodes_b.
    edge_out, na_out, sumb_part = pl.pallas_call(
        _fused_kernel_par,
        grid=(num_tiles,),
        in_specs=[edge_spec, na_spec, pb_spec] + w_specs,
        out_specs=(edge_out_spec, na_out_spec,
                   pl.BlockSpec((1, B, E), lambda i: (i, 0, 0))),
        out_shape=(jax.ShapeDtypeStruct((A, B, E), jnp.bfloat16),
                   jax.ShapeDtypeStruct((A, ND), jnp.float32),
                   jax.ShapeDtypeStruct((num_tiles, B, E), jnp.float32)),
        compiler_params=pltpu.CompilerParams(
            dimension_semantics=("parallel",),
            vmem_limit_bytes=vmem_limit),
        cost_estimate=pl.CostEstimate(
            flops=int(mm_flops + ew_flops),
            transcendentals=0,
            bytes_accessed=int(io_bytes + weight_bytes + num_tiles * B * E * 4)),
    )(edge_f32, na_bf, pb, w1a, w1e, w2, b2, w3, b3, w4, b4)

    sumb = jnp.sum(sumb_part, axis=0)            # tiny cross-tile reduce keeps axis parallel

    nb_out = pl.pallas_call(
        _node_b_kernel,
        out_shape=jax.ShapeDtypeStruct((B, ND), jnp.float32),
        in_specs=[_VMEM] * 6,
        out_specs=_VMEM,
        cost_estimate=pl.CostEstimate(
            flops=int(nb_flops), transcendentals=0,
            bytes_accessed=int(B * (ND * 2 + E * 4 + ND * 4)
                               + 2 * ((ND + E) * ND + ND * ND) + 4 * 2 * ND)),
    )(nb_bf, sumb, w3, b3, w4, b4)

    return edge_out, na_out, nb_out


# ---------------------------------------------------------------------------
# Pure-JAX references
# ---------------------------------------------------------------------------
def reference_forward_mixed(edge_embeds, nodes_a, nodes_b, params):
    """Mirrors the kernel's mixed precision (bf16 MXU operands, f32 accumulate)."""
    bf, f32 = jnp.bfloat16, jnp.float32
    mm = lambda x, w: jnp.dot(x, w.astype(bf), preferred_element_type=f32)
    A, B, E2 = edge_embeds.shape
    E = E2 // 2
    e = edge_embeds.astype(bf)
    na = nodes_a.astype(bf)
    nb = nodes_b.astype(bf)

    pa = mm(na, params["w1_a"])
    pb = mm(nb, params["w1_b"]) + params["b1"]
    pe = mm(e.reshape(A * B, E2), params["w1_e"]).reshape(A, B, E)
    h1 = jax.nn.relu(pa[:, None, :] + pb[None, :, :] + pe)
    h2 = mm(h1.astype(bf).reshape(A * B, E), params["w2"]).reshape(A, B, E)
    h2 = jax.nn.relu(h2 + params["b2"])

    suma = h2.sum(axis=1)
    sumb = h2.sum(axis=0)

    def node_mlp(x_bf, s_f32):
        h = jax.nn.relu(mm(x_bf, params["w3_n"]) + mm(s_f32.astype(bf), params["w3_e"])
                        + params["b3"])
        return jax.nn.relu(mm(h.astype(bf), params["w4"]) + params["b4"])

    return h2, node_mlp(na, suma), node_mlp(nb, sumb)


def reference_forward_f32(edge_embeds, nodes_a, nodes_b, params):
    """Literal float32 module semantics (concat + Linear), for a loose sanity check."""
    A, B, _ = edge_embeds.shape
    a_exp = jnp.broadcast_to(nodes_a[:, None, :], (A, B, nodes_a.shape[-1]))
    b_exp = jnp.broadcast_to(nodes_b[None, :, :], (A, B, nodes_b.shape[-1]))
    edge_in = jnp.concatenate([a_exp, b_exp, edge_embeds], axis=-1)
    w1 = jnp.concatenate([params["w1_a"], params["w1_b"], params["w1_e"]], axis=0)
    h = jax.nn.relu(edge_in @ w1 + params["b1"])
    edge_latent = jax.nn.relu(h @ params["w2"] + params["b2"])

    w3 = jnp.concatenate([params["w3_n"], params["w3_e"]], axis=0)

    def node_mlp(x):
        h = jax.nn.relu(x @ w3 + params["b3"])
        return jax.nn.relu(h @ params["w4"] + params["b4"])

    na_in = jnp.concatenate([nodes_a, edge_latent.sum(axis=1)], axis=-1)
    nb_in = jnp.concatenate([nodes_b, edge_latent.sum(axis=0)], axis=-1)
    return edge_latent, node_mlp(na_in), node_mlp(nb_in)


# ---------------------------------------------------------------------------
# Deterministic parameter init + smoke test
# ---------------------------------------------------------------------------
def init_params(key, node_dim, edge_dim):
    edge_in_dim = 2 * node_dim + 2 * edge_dim
    node_in_dim = node_dim + edge_dim
    ks = jax.random.split(key, 8)
    s = 0.1
    w1 = s * jax.random.normal(ks[0], (edge_in_dim, edge_dim), jnp.float32)
    w3 = s * jax.random.normal(ks[4], (node_in_dim, node_dim), jnp.float32)
    return {
        "w1_a": w1[:node_dim],
        "w1_b": w1[node_dim:2 * node_dim],
        "w1_e": w1[2 * node_dim:],
        "b1": s * jax.random.normal(ks[1], (1, edge_dim), jnp.float32),
        "w2": s * jax.random.normal(ks[2], (edge_dim, edge_dim), jnp.float32),
        "b2": s * jax.random.normal(ks[3], (1, edge_dim), jnp.float32),
        "w3_n": w3[:node_dim],
        "w3_e": w3[node_dim:],
        "b3": s * jax.random.normal(ks[5], (1, node_dim), jnp.float32),
        "w4": s * jax.random.normal(ks[6], (node_dim, node_dim), jnp.float32),
        "b4": s * jax.random.normal(ks[7], (1, node_dim), jnp.float32),
    }


def _check(outs, m_ref, f_ref):
    e, a, b = outs
    e = e.astype(jnp.float32)
    m_e, m_a, m_b = m_ref
    assert jnp.allclose(e, m_e, atol=3e-2, rtol=3e-2)
    assert jnp.allclose(a, m_a, atol=3e-2, rtol=3e-2)
    assert jnp.allclose(b, m_b, atol=3e-2, rtol=3e-2)
    f_e, f_a, f_b = f_ref
    assert jnp.allclose(e, f_e, atol=2e-1, rtol=2e-1)
    assert jnp.allclose(a, f_a, atol=2e-1, rtol=2e-1)
    assert jnp.allclose(b, f_b, atol=2e-1, rtol=2e-1)


if __name__ == "__main__":
    node_dim, edge_dim = 32, 32
    A, B = 16, 16

    key = jax.random.PRNGKey(0)
    k_e, k_a, k_b, k_p = jax.random.split(key, 4)

    edge_embeds = jax.random.normal(k_e, (A, B, 2 * edge_dim), jnp.float32)
    nodes_a = jax.random.normal(k_a, (A, node_dim), jnp.float32)
    nodes_b = jax.random.normal(k_b, (B, node_dim), jnp.float32)
    params = init_params(k_p, node_dim, edge_dim)

    m_ref = reference_forward_mixed(edge_embeds, nodes_a, nodes_b, params)
    f_ref = reference_forward_f32(edge_embeds, nodes_a, nodes_b, params)

    # 1) Auto-configured path for the local TPU generation (tiny problem -> ta=A or A/2).
    fwd_auto = jax.jit(bipartite_mp_forward)
    outs = jax.block_until_ready(fwd_auto(edge_embeds, nodes_a, nodes_b, params))
    _check(outs, m_ref, f_ref)

    # 2) Single-TC structure forced with 2 A tiles (exercises scratch accumulation +
    #    fused nodes_b finalize under a pipelined "arbitrary" grid).
    fwd_seq = jax.jit(functools.partial(bipartite_mp_forward, ta=8, multi_tc=False))
    outs = jax.block_until_ready(fwd_seq(edge_embeds, nodes_a, nodes_b, params))
    _check(outs, m_ref, f_ref)

    # 3) Multi-TC structure forced with 2 A tiles (exercises the parallel grid with
    #    per-tile sumb partials + tiny nodes_b kernel; also valid on single-TC parts).
    fwd_par = jax.jit(functools.partial(bipartite_mp_forward, ta=8, multi_tc=True))
    outs = jax.block_until_ready(fwd_par(edge_embeds, nodes_a, nodes_b, params))
    _check(outs, m_ref, f_ref)

    print("KERNEL_OK")
</pallas_src>

<mosaic_0001>
module attributes {stable_mosaic.version = 11 : i64} {
  func.func @_fused_kernel_seq(%arg0: i32, %arg1: memref<16x16x64xf32, #tpu.memory_space<vmem>>, %arg2: memref<16x32xbf16, #tpu.memory_space<vmem>>, %arg3: memref<16x32xf32, #tpu.memory_space<vmem>>, %arg4: memref<16x32xbf16, #tpu.memory_space<vmem>>, %arg5: memref<32x32xbf16, #tpu.memory_space<vmem>>, %arg6: memref<64x32xbf16, #tpu.memory_space<vmem>>, %arg7: memref<32x32xbf16, #tpu.memory_space<vmem>>, %arg8: memref<1x32xf32, #tpu.memory_space<vmem>>, %arg9: memref<64x32xbf16, #tpu.memory_space<vmem>>, %arg10: memref<1x32xf32, #tpu.memory_space<vmem>>, %arg11: memref<32x32xbf16, #tpu.memory_space<vmem>>, %arg12: memref<1x32xf32, #tpu.memory_space<vmem>>, %arg13: memref<16x16x32xbf16, #tpu.memory_space<vmem>>, %arg14: memref<16x32xf32, #tpu.memory_space<vmem>>, %arg15: memref<16x32xf32, #tpu.memory_space<vmem>>, %arg16: memref<16x32xf32, #tpu.memory_space<vmem>>) attributes {dimension_semantics = [#tpu.dimension_semantics<arbitrary>], iteration_bounds = array<i64: 1>, scalar_prefetch = 0 : i64, scratch_operands = 1 : i64, tpu.core_type = #tpu.core_type<tc>, window_params = [{transform_indices = @transform_0, window_bounds = array<i64: 16, 16, 64>}, {transform_indices = @transform_1, window_bounds = array<i64: 16, 32>}, {pipeline_mode = #tpu.pipeline_mode<synchronous>, transform_indices = @transform_2, window_bounds = array<i64: 16, 32>}, {pipeline_mode = #tpu.pipeline_mode<synchronous>, transform_indices = @transform_3, window_bounds = array<i64: 16, 32>}, {pipeline_mode = #tpu.pipeline_mode<synchronous>, transform_indices = @transform_4, window_bounds = array<i64: 32, 32>}, {pipeline_mode = #tpu.pipeline_mode<synchronous>, transform_indices = @transform_5, window_bounds = array<i64: 64, 32>}, {pipeline_mode = #tpu.pipeline_mode<synchronous>, transform_indices = @transform_6, window_bounds = array<i64: 32, 32>}, {pipeline_mode = #tpu.pipeline_mode<synchronous>, transform_indices = @transform_7, window_bounds = array<i64: 1, 32>}, {pipeline_mode = #tpu.pipeline_mode<synchronous>, transform_indices = @transform_8, window_bounds = array<i64: 64, 32>}, {pipeline_mode = #tpu.pipeline_mode<synchronous>, transform_indices = @transform_9, window_bounds = array<i64: 1, 32>}, {pipeline_mode = #tpu.pipeline_mode<synchronous>, transform_indices = @transform_10, window_bounds = array<i64: 32, 32>}, {pipeline_mode = #tpu.pipeline_mode<synchronous>, transform_indices = @transform_11, window_bounds = array<i64: 1, 32>}, {transform_indices = @transform_12, window_bounds = array<i64: 16, 16, 32>}, {transform_indices = @transform_13, window_bounds = array<i64: 16, 32>}, {pipeline_mode = #tpu.pipeline_mode<synchronous>, transform_indices = @transform_14, window_bounds = array<i64: 16, 32>}]} {
    %c0_i32 = arith.constant 0 : i32
    %0 = arith.cmpi eq, %arg0, %c0_i32 : i32
    %1 = arith.extui %0 : i1 to i32
    %c0_i32_0 = arith.constant 0 : i32
    %2 = arith.cmpi ne, %1, %c0_i32_0 : i32
    scf.if %2 {
      %cst_44 = arith.constant 0.000000e+00 : f32
      %59 = vector.broadcast %cst_44 : f32 to vector<16x32xf32>
      %c0_45 = arith.constant 0 : index
      %c0_46 = arith.constant 0 : index
      %60 = vector.load %arg16[%c0_45, %c0_46] : memref<16x32xf32, #tpu.memory_space<vmem>>, vector<16x32xf32>
      tpu.vector_store %arg16[%c0_45, %c0_46], %59 {strides = array<i32>} : memref<16x32xf32, #tpu.memory_space<vmem>>, vector<16x32xf32>,
    } else {
    }
    %c0 = arith.constant 0 : index
    %c0_1 = arith.constant 0 : index
    %3 = vector.load %arg2[%c0, %c0_1] : memref<16x32xbf16, #tpu.memory_space<vmem>>, vector<16x32xbf16>
    %c0_2 = arith.constant 0 : index
    %c0_3 = arith.constant 0 : index
    %4 = vector.load %arg5[%c0_2, %c0_3] : memref<32x32xbf16, #tpu.memory_space<vmem>>, vector<32x32xbf16>
    %cst = arith.constant dense<0.000000e+00> : vector<16x32xf32>
    %5 = tpu.matmul %3, %4, %cst {dimension_numbers = #tpu.dot_dimension_numbers<[1], [0], [0], [1], [0, 0, 1, 1], [], []>} : vector<16x32xbf16>, vector<32x32xbf16>, vector<16x32xf32> -> vector<16x32xf32>
    %c0_4 = arith.constant 0 : index
    %c0_5 = arith.constant 0 : index
    %c0_6 = arith.constant 0 : index
    %6 = vector.load %arg1[%c0_4, %c0_5, %c0_6] : memref<16x16x64xf32, #tpu.memory_space<vmem>>, vector<16x16x64xf32>
    %7 = arith.truncf %6 : vector<16x16x64xf32> to vector<16x16x64xbf16>
    %8 = vector.shape_cast %7 : vector<16x16x64xbf16> to vector<256x64xbf16>
    %c0_7 = arith.constant 0 : index
    %c0_8 = arith.constant 0 : index
    %9 = vector.load %arg6[%c0_7, %c0_8] : memref<64x32xbf16, #tpu.memory_space<vmem>>, vector<64x32xbf16>
    %cst_9 = arith.constant dense<0.000000e+00> : vector<256x32xf32>
    %10 = tpu.matmul %8, %9, %cst_9 {dimension_numbers = #tpu.dot_dimension_numbers<[1], [0], [0], [1], [0, 0, 1, 1], [], []>} : vector<256x64xbf16>, vector<64x32xbf16>, vector<256x32xf32> -> vector<256x32xf32>
    %11 = vector.shape_cast %5 : vector<16x32xf32> to vector<16x1x32xf32>
    %c0_10 = arith.constant 0 : index
    %c0_11 = arith.constant 0 : index
    %12 = vector.load %arg3[%c0_10, %c0_11] : memref<16x32xf32, #tpu.memory_space<vmem>>, vector<16x32xf32>
    %13 = vector.shape_cast %12 : vector<16x32xf32> to vector<1x16x32xf32>
    %14 = vector.broadcast %11 : vector<16x1x32xf32> to vector<16x16x32xf32>
    %15 = vector.broadcast %13 : vector<1x16x32xf32> to vector<16x16x32xf32>
    %16 = arith.addf %14, %15 : vector<16x16x32xf32>
    %17 = vector.shape_cast %16 : vector<16x16x32xf32> to vector<256x32xf32>
    %18 = arith.addf %10, %17 : vector<256x32xf32>
    %cst_12 = arith.constant 0.000000e+00 : f32
    %19 = vector.broadcast %cst_12 : f32 to vector<256x32xf32>
    %20 = arith.maximumf %18, %19 : vector<256x32xf32>
    %21 = arith.truncf %20 : vector<256x32xf32> to vector<256x32xbf16>
    %c0_13 = arith.constant 0 : index
    %c0_14 = arith.constant 0 : index
    %22 = vector.load %arg7[%c0_13, %c0_14] : memref<32x32xbf16, #tpu.memory_space<vmem>>, vector<32x32xbf16>
    %cst_15 = arith.constant dense<0.000000e+00> : vector<256x32xf32>
    %23 = tpu.matmul %21, %22, %cst_15 {dimension_numbers = #tpu.dot_dimension_numbers<[1], [0], [0], [1], [0, 0, 1, 1], [], []>} : vector<256x32xbf16>, vector<32x32xbf16>, vector<256x32xf32> -> vector<256x32xf32>
    %c0_16 = arith.constant 0 : index
    %c0_17 = arith.constant 0 : index
    %24 = vector.load %arg8[%c0_16, %c0_17] : memref<1x32xf32, #tpu.memory_space<vmem>>, vector<1x32xf32>
    %25 = vector.broadcast %24 : vector<1x32xf32> to vector<256x32xf32>
    %26 = arith.addf %23, %25 : vector<256x32xf32>
    %cst_18 = arith.constant 0.000000e+00 : f32
    %27 = vector.broadcast %cst_18 : f32 to vector<256x32xf32>
    %28 = arith.maximumf %26, %27 : vector<256x32xf32>
    %29 = vector.shape_cast %28 : vector<256x32xf32> to vector<16x16x32xf32>
    %30 = arith.truncf %29 : vector<16x16x32xf32> to vector<16x16x32xbf16>
    %c0_19 = arith.constant 0 : index
    %c0_20 = arith.constant 0 : index
    %c0_21 = arith.constant 0 : index
    %31 = vector.load %arg13[%c0_19, %c0_20, %c0_21] : memref<16x16x32xbf16, #tpu.memory_space<vmem>>, vector<16x16x32xbf16>
    tpu.vector_store %arg13[%c0_19, %c0_20, %c0_21], %30 {strides = array<i32>} : memref<16x16x32xbf16, #tpu.memory_space<vmem>>, vector<16x16x32xbf16>,
    %cst_22 = arith.constant dense<0.000000e+00> : vector<16x32xf32>
    %32 = vector.multi_reduction <add>, %29, %cst_22 [1] : vector<16x16x32xf32> to vector<16x32xf32>
    %33 = arith.extf %3 : vector<16x32xbf16> to vector<16x32xf32>
    %34 = tpu.concatenate %33, %32 in 1 : vector<16x32xf32>, vector<16x32xf32> -> vector<16x64xf32>
    %35 = arith.truncf %34 : vector<16x64xf32> to vector<16x64xbf16>
    %c0_23 = arith.constant 0 : index
    %c0_24 = arith.constant 0 : index
    %36 = vector.load %arg9[%c0_23, %c0_24] : memref<64x32xbf16, #tpu.memory_space<vmem>>, vector<64x32xbf16>
    %cst_25 = arith.constant dense<0.000000e+00> : vector<16x32xf32>
    %37 = tpu.matmul %35, %36, %cst_25 {dimension_numbers = #tpu.dot_dimension_numbers<[1], [0], [0], [1], [0, 0, 1, 1], [], []>} : vector<16x64xbf16>, vector<64x32xbf16>, vector<16x32xf32> -> vector<16x32xf32>
    %c0_26 = arith.constant 0 : index
    %c0_27 = arith.constant 0 : index
    %38 = vector.load %arg10[%c0_26, %c0_27] : memref<1x32xf32, #tpu.memory_space<vmem>>, vector<1x32xf32>
    %39 = vector.broadcast %38 : vector<1x32xf32> to vector<16x32xf32>
    %40 = arith.addf %37, %39 : vector<16x32xf32>
    %cst_28 = arith.constant 0.000000e+00 : f32
    %41 = vector.broadcast %cst_28 : f32 to vector<16x32xf32>
    %42 = arith.maximumf %40, %41 : vector<16x32xf32>
    %43 = arith.truncf %42 : vector<16x32xf32> to vector<16x32xbf16>
    %c0_29 = arith.constant 0 : index
    %c0_30 = arith.constant 0 : index
    %44 = vector.load %arg11[%c0_29, %c0_30] : memref<32x32xbf16, #tpu.memory_space<vmem>>, vector<32x32xbf16>
    %cst_31 = arith.constant dense<0.000000e+00> : vector<16x32xf32>
    %45 = tpu.matmul %43, %44, %cst_31 {dimension_numbers = #tpu.dot_dimension_numbers<[1], [0], [0], [1], [0, 0, 1, 1], [], []>} : vector<16x32xbf16>, vector<32x32xbf16>, vector<16x32xf32> -> vector<16x32xf32>
    %c0_32 = arith.constant 0 : index
    %c0_33 = arith.constant 0 : index
    %46 = vector.load %arg12[%c0_32, %c0_33] : memref<1x32xf32, #tpu.memory_space<vmem>>, vector<1x32xf32>
    %47 = vector.broadcast %46 : vector<1x32xf32> to vector<16x32xf32>
    %48 = arith.addf %45, %47 : vector<16x32xf32>
    %cst_34 = arith.constant 0.000000e+00 : f32
    %49 = vector.broadcast %cst_34 : f32 to vector<16x32xf32>
    %50 = arith.maximumf %48, %49 : vector<16x32xf32>
    %c0_35 = arith.constant 0 : index
    %c0_36 = arith.constant 0 : index
    %51 = vector.load %arg14[%c0_35, %c0_36] : memref<16x32xf32, #tpu.memory_space<vmem>>, vector<16x32xf32>
    tpu.vector_store %arg14[%c0_35, %c0_36], %50 {strides = array<i32>} : memref<16x32xf32, #tpu.memory_space<vmem>>, vector<16x32xf32>,
    %cst_37 = arith.constant dense<0.000000e+00> : vector<16x32xf32>
    %52 = vector.multi_reduction <add>, %29, %cst_37 [0] : vector<16x16x32xf32> to vector<16x32xf32>
    %c0_38 = arith.constant 0 : index
    %c0_39 = arith.constant 0 : index
    %53 = vector.load %arg16[%c0_38, %c0_39] : memref<16x32xf32, #tpu.memory_space<vmem>>, vector<16x32xf32>
    %54 = arith.addf %53, %52 : vector<16x32xf32>
    %c0_40 = arith.constant 0 : index
    %c0_41 = arith.constant 0 : index
    %55 = vector.load %arg16[%c0_40, %c0_41] : memref<16x32xf32, #tpu.memory_space<vmem>>, vector<16x32xf32>
    tpu.vector_store %arg16[%c0_40, %c0_41], %54 {strides = array<i32>} : memref<16x32xf32, #tpu.memory_space<vmem>>, vector<16x32xf32>,
    %c0_i32_42 = arith.constant 0 : i32
    %56 = arith.cmpi eq, %arg0, %c0_i32_42 : i32
    %57 = arith.extui %56 : i1 to i32
    %c0_i32_43 = arith.constant 0 : i32
    %58 = arith.cmpi ne, %57, %c0_i32_43 : i32
    scf.if %58 {
      %c0_44 = arith.constant 0 : index
      %c0_45 = arith.constant 0 : index
      %59 = vector.load %arg4[%c0_44, %c0_45] : memref<16x32xbf16, #tpu.memory_space<vmem>>, vector<16x32xbf16>
      %c0_46 = arith.constant 0 : index
      %c0_47 = arith.constant 0 : index
      %60 = vector.load %arg16[%c0_46, %c0_47] : memref<16x32xf32, #tpu.memory_space<vmem>>, vector<16x32xf32>
      %61 = arith.extf %59 : vector<16x32xbf16> to vector<16x32xf32>
      %62 = tpu.concatenate %61, %60 in 1 : vector<16x32xf32>, vector<16x32xf32> -> vector<16x64xf32>
      %63 = arith.truncf %62 : vector<16x64xf32> to vector<16x64xbf16>
      %c0_48 = arith.constant 0 : index
      %c0_49 = arith.constant 0 : index
      %64 = vector.load %arg9[%c0_48, %c0_49] : memref<64x32xbf16, #tpu.memory_space<vmem>>, vector<64x32xbf16>
      %cst_50 = arith.constant dense<0.000000e+00> : vector<16x32xf32>
      %65 = tpu.matmul %63, %64, %cst_50 {dimension_numbers = #tpu.dot_dimension_numbers<[1], [0], [0], [1], [0, 0, 1, 1], [], []>} : vector<16x64xbf16>, vector<64x32xbf16>, vector<16x32xf32> -> vector<16x32xf32>
      %c0_51 = arith.constant 0 : index
      %c0_52 = arith.constant 0 : index
      %66 = vector.load %arg10[%c0_51, %c0_52] : memref<1x32xf32, #tpu.memory_space<vmem>>, vector<1x32xf32>
      %67 = vector.broadcast %66 : vector<1x32xf32> to vector<16x32xf32>
      %68 = arith.addf %65, %67 : vector<16x32xf32>
      %cst_53 = arith.constant 0.000000e+00 : f32
      %69 = vector.broadcast %cst_53 : f32 to vector<16x32xf32>
      %70 = arith.maximumf %68, %69 : vector<16x32xf32>
      %71 = arith.truncf %70 : vector<16x32xf32> to vector<16x32xbf16>
      %c0_54 = arith.constant 0 : index
      %c0_55 = arith.constant 0 : index
      %72 = vector.load %arg11[%c0_54, %c0_55] : memref<32x32xbf16, #tpu.memory_space<vmem>>, vector<32x32xbf16>
      %cst_56 = arith.constant dense<0.000000e+00> : vector<16x32xf32>
      %73 = tpu.matmul %71, %72, %cst_56 {dimension_numbers = #tpu.dot_dimension_numbers<[1], [0], [0], [1], [0, 0, 1, 1], [], []>} : vector<16x32xbf16>, vector<32x32xbf16>, vector<16x32xf32> -> vector<16x32xf32>
      %c0_57 = arith.constant 0 : index
      %c0_58 = arith.constant 0 : index
      %74 = vector.load %arg12[%c0_57, %c0_58] : memref<1x32xf32, #tpu.memory_space<vmem>>, vector<1x32xf32>
      %75 = vector.broadcast %74 : vector<1x32xf32> to vector<16x32xf32>
      %76 = arith.addf %73, %75 : vector<16x32xf32>
      %cst_59 = arith.constant 0.000000e+00 : f32
      %77 = vector.broadcast %cst_59 : f32 to vector<16x32xf32>
      %78 = arith.maximumf %76, %77 : vector<16x32xf32>
      %c0_60 = arith.constant 0 : index
      %c0_61 = arith.constant 0 : index
      %79 = vector.load %arg15[%c0_60, %c0_61] : memref<16x32xf32, #tpu.memory_space<vmem>>, vector<16x32xf32>
      tpu.vector_store %arg15[%c0_60, %c0_61], %78 {strides = array<i32>} : memref<16x32xf32, #tpu.memory_space<vmem>>, vector<16x32xf32>,
    } else {
    }
    return
  }
  func.func @transform_0(%arg0: i32) -> (i32, i32, i32) {
    %c0_i32 = arith.constant 0 : i32
    %c0_i32_0 = arith.constant 0 : i32
    %c0_i32_1 = arith.constant 0 : i32
    return %arg0, %c0_i32, %c0_i32_0 : i32, i32, i32
  }
  func.func @transform_1(%arg0: i32) -> (i32, i32) {
    %c0_i32 = arith.constant 0 : i32
    %c0_i32_0 = arith.constant 0 : i32
    return %arg0, %c0_i32 : i32, i32
  }
  func.func @transform_2(%arg0: i32) -> (i32, i32) {
    %c0_i32 = arith.constant 0 : i32
    %c0_i32_0 = arith.constant 0 : i32
    %c0_i32_1 = arith.constant 0 : i32
    return %c0_i32, %c0_i32_0 : i32, i32
  }
  func.func @transform_3(%arg0: i32) -> (i32, i32) {
    %c0_i32 = arith.constant 0 : i32
    %c0_i32_0 = arith.constant 0 : i32
    %c0_i32_1 = arith.constant 0 : i32
    return %c0_i32, %c0_i32_0 : i32, i32
  }
  func.func @transform_4(%arg0: i32) -> (i32, i32) {
    %c0_i32 = arith.constant 0 : i32
    %c0_i32_0 = arith.constant 0 : i32
    %c0_i32_1 = arith.constant 0 : i32
    return %c0_i32, %c0_i32_0 : i32, i32
  }
  func.func @transform_5(%arg0: i32) -> (i32, i32) {
    %c0_i32 = arith.constant 0 : i32
    %c0_i32_0 = arith.constant 0 : i32
    %c0_i32_1 = arith.constant 0 : i32
    return %c0_i32, %c0_i32_0 : i32, i32
  }
  func.func @transform_6(%arg0: i32) -> (i32, i32) {
    %c0_i32 = arith.constant 0 : i32
    %c0_i32_0 = arith.constant 0 : i32
    %c0_i32_1 = arith.constant 0 : i32
    return %c0_i32, %c0_i32_0 : i32, i32
  }
  func.func @transform_7(%arg0: i32) -> (i32, i32) {
    %c0_i32 = arith.constant 0 : i32
    %c0_i32_0 = arith.constant 0 : i32
    %c0_i32_1 = arith.constant 0 : i32
    return %c0_i32, %c0_i32_0 : i32, i32
  }
  func.func @transform_8(%arg0: i32) -> (i32, i32) {
    %c0_i32 = arith.constant 0 : i32
    %c0_i32_0 = arith.constant 0 : i32
    %c0_i32_1 = arith.constant 0 : i32
    return %c0_i32, %c0_i32_0 : i32, i32
  }
  func.func @transform_9(%arg0: i32) -> (i32, i32) {
    %c0_i32 = arith.constant 0 : i32
    %c0_i32_0 = arith.constant 0 : i32
    %c0_i32_1 = arith.constant 0 : i32
    return %c0_i32, %c0_i32_0 : i32, i32
  }
  func.func @transform_10(%arg0: i32) -> (i32, i32) {
    %c0_i32 = arith.constant 0 : i32
    %c0_i32_0 = arith.constant 0 : i32
    %c0_i32_1 = arith.constant 0 : i32
    return %c0_i32, %c0_i32_0 : i32, i32
  }
  func.func @transform_11(%arg0: i32) -> (i32, i32) {
    %c0_i32 = arith.constant 0 : i32
    %c0_i32_0 = arith.constant 0 : i32
    %c0_i32_1 = arith.constant 0 : i32
    return %c0_i32, %c0_i32_0 : i32, i32
  }
  func.func @transform_12(%arg0: i32) -> (i32, i32, i32) {
    %c0_i32 = arith.constant 0 : i32
    %c0_i32_0 = arith.constant 0 : i32
    %c0_i32_1 = arith.constant 0 : i32
    return %arg0, %c0_i32, %c0_i32_0 : i32, i32, i32
  }
  func.func @transform_13(%arg0: i32) -> (i32, i32) {
    %c0_i32 = arith.constant 0 : i32
    %c0_i32_0 = arith.constant 0 : i32
    return %arg0, %c0_i32 : i32, i32
  }
  func.func @transform_14(%arg0: i32) -> (i32, i32) {
    %c0_i32 = arith.constant 0 : i32
    %c0_i32_0 = arith.constant 0 : i32
    %c0_i32_1 = arith.constant 0 : i32
    return %c0_i32, %c0_i32_0 : i32, i32
  }
}

</mosaic_0001>

<bundles_post_ra>
// kernel: bipartite_mp_forward.1
= control target key start
LH: loop header
LB: loop body
LE: loop exit
PB: predicated region body
PF: predicated region fallthrough
CT: control target
= control target key end

     0   :  { %20 = vsyncpa [#allocation4], 0  ;;  %s2048_s0 = inlined_call_operand.vmem [shape: f32[16,16,64], index: 0, kind: input, shape index: {}]   ;;  %s2049_s1 = inlined_call_operand.vmem [shape: bf16[16,32], index: 1, kind: input, shape index: {}]   ;;  %s2050_s2 = inlined_call_operand.vmem [shape: f32[16,32], index: 2, kind: input, shape index: {}]   ;;  %s2051_s3 = inlined_call_operand.vmem [shape: bf16[16,32], index: 3, kind: input, shape index: {}]   ;;  %s2052_s4 = inlined_call_operand.vmem [shape: bf16[32,32], index: 4, kind: input, shape index: {}]   ;;  %s2053_s5 = inlined_call_operand.vmem [shape: bf16[64,32], index: 5, kind: input, shape index: {}]   ;;  %s2054_s6 = inlined_call_operand.vmem [shape: bf16[32,32], index: 6, kind: input, shape index: {}]   ;;  %s2055_s7 = inlined_call_operand.vmem [shape: f32[1,32], index: 7, kind: input, shape index: {}]   ;;  %s2056_s8 = inlined_call_operand.vmem [shape: bf16[64,32], index: 8, kind: input, shape index: {}]   ;;  %s2057_s9 = inlined_call_operand.vmem [shape: f32[1,32], index: 9, kind: input, shape index: {}]   ;;  %s2058_s10 = inlined_call_operand.vmem [shape: bf16[32,32], index: 10, kind: input, shape index: {}]   ;;  %s2059_s11 = inlined_call_operand.vmem [shape: f32[1,32], index: 11, kind: input, shape index: {}]   ;;  %s2060_s12 = inlined_call_operand.hbm [shape: bf16[16,16,32], index: 12, kind: output, shape index: {0}]   ;;  %s2061_s13 = inlined_call_operand.hbm [shape: f32[16,32], index: 13, kind: output, shape index: {1}]   ;;  %s2062_s14 = inlined_call_operand.hbm [shape: f32[16,32], index: 14, kind: output, shape index: {2}]  }
   0x1   :  { %v1415_v0 = vld [vmem:[%s2053_s5 + $0x18] sm:$0xff]  ;;  %v1411_v1 = vld [vmem:[%s2052_s4 + $0x8] sm:$0xff]  ;;  %v1414_v2 = vld [vmem:[%s2053_s5 + $0x10] sm:$0xff] }
   0x2   :  { %406 = vmatpush.bf16.msra.mxu1 %v1415_v0  ;;  %1434 = vmatpush.bf16.msra.mxu3 %v1415_v0  ;;  %v95_v3 = vld [vmem:[%s2048_s0] sm:$0xff]  ;;  %v96_v4 = vld [vmem:[%s2048_s0 + $0x8] sm:$0xff]  ;;  %v113_v6 = vld [vmem:[%s2048_s0 + $0x90] sm:$0xff] }
   0x3   :  { %87 = vmatpush.bf16.msra.mxu0 %v1411_v1  ;;  %v1410_v5 = vld [vmem:[%s2052_s4] sm:$0xff]  ;;  %v114_v7 = vld [vmem:[%s2048_s0 + $0x98] sm:$0xff]  ;;  %v1413_v8 = vld [vmem:[%s2053_s5 + $0x8] sm:$0xff]  ;;  %v127_v9 = vpack.c.bf16 %v95_v3, %v95_v3  ;;  %v128_v10 = vpack.c.bf16 %v96_v4, %v96_v4  ;;  %v145_v11 = vpack.c.bf16 %v113_v6, %v113_v6 }
   0x4   :  { %v146_v12 = vpack.c.bf16 %v114_v7, %v114_v7  ;;  %v1409_v13 = vld [vmem:[%s2049_s1] sm:$0xff] }
   0x6   :  { %407 = vmatpush.bf16.msra.mxu1 %v1414_v2  ;;  %1435 = vmatpush.bf16.msra.mxu3 %v1414_v2 }
   0x7   :  { %88 = vmatpush.bf16.msra.mxu0 %v1410_v5 }
   0x8   :  { %21 = vsyncpa [#allocation6], 0  ;;  %vm51_vm0 = vcmask 261120   ;;  %v281_v14 = vunpack.c.l.b16 %v127_v9  ;;  %v282_v15 = vunpack.c.l.b16 %v128_v10  ;;  %v299_v16 = vunpack.c.l.b16 %v145_v11  ;;  %v1412_v18 = vld [vmem:[%s2053_s5] sm:$0xff]  ;;  %v97_v21 = vld [vmem:[%s2048_s0 + $0x10] sm:$0xff]  ;;  %s1541_s16 = smov 32  }
   0x9   :  { %v300_v17 = vunpack.c.l.b16 %v146_v12  ;;  %vm353_vm1 = vcmask 523264   ;;  %v98_v22 = vld [vmem:[%s2048_s0 + $0x18] sm:$0xff]  ;;  %v115_v23 = vld [vmem:[%s2048_s0 + $0xa0] sm:$0xff]  ;;  %v116_v24 = vld [vmem:[%s2048_s0 + $0xa8] sm:$0xff]  ;;  %v129_v25 = vpack.c.bf16 %v97_v21, %v97_v21  ;;  %vm760_vm2 = vcmask 257024   ;;  %s1241_s17 = sshll.u32 %s2060_s12, 4  ;;  %s1242_s17 = int_to_ptr.hbm [resolvable:$true] %s1241_s17 }
   0xa   :  { %408 = vmatpush.bf16.msra.mxu1 %v1413_v8  ;;  %1436 = vmatpush.bf16.msra.mxu3 %v1413_v8  ;;  %v313_v19 = vpack.c.b16 %v282_v15, %v281_v14  ;;  %v130_v26 = vpack.c.bf16 %v98_v22, %v98_v22  ;;  %v147_v27 = vpack.c.bf16 %v115_v23, %v115_v23  ;;  %v99_v35 = vld [vmem:[%s2048_s0 + $0x20] sm:$0xff]  ;;  %v100_v36 = vld [vmem:[%s2048_s0 + $0x28] sm:$0xff]  ;;  %v117_v37 = vld [vmem:[%s2048_s0 + $0xb0] sm:$0xff]  ;;  %vm955_vm3 = vcmask 1041409   ;;  %s1542_s18 = smov [#allocation3]   ;;  %s1543_s20 = smov 64  }
   0xb   :  { %1300 = vmatmul.msk.bf16.vlgmr.msra.gmra.mxu0 %vm51_vm0, %v1409_v13  ;;  %v322_v20 = vpack.c.b16 %v300_v17, %v299_v16  ;;  %v148_v28 = vpack.c.bf16 %v116_v24, %v116_v24  ;;  %v283_v29 = vunpack.c.l.b16 %v129_v25  ;;  %v118_v38 = vld [vmem:[%s2048_s0 + $0xb8] sm:$0xff]  ;;  %v131_v39 = vpack.c.bf16 %v99_v35, %v99_v35  ;;  %v101_v49 = vld [vmem:[%s2048_s0 + $0x30] sm:$0xff]  ;;  %v119_v51 = vld [vmem:[%s2048_s0 + $0xc0] sm:$0xff]  ;;  %s1239_s19 = sshll.u32 %s1542_s18, 4  ;;  %s1544_s21 = smov 4   ;;  %s1240_s19 = int_to_ptr.vmem [resolvable:$true] %s1239_s19 }
   0xc   :  { %v284_v30 = vunpack.c.l.b16 %v130_v26  ;;  %v301_v31 = vunpack.c.l.b16 %v147_v27  ;;  %v132_v40 = vpack.c.bf16 %v100_v36, %v100_v36  ;;  %v149_v41 = vpack.c.bf16 %v117_v37, %v117_v37  ;;  %v102_v50 = vld [vmem:[%s2048_s0 + $0x38] sm:$0xff]  ;;  %v120_v52 = vld [vmem:[%s2048_s0 + $0xc8] sm:$0xff]  ;;  %v103_v63 = vld [vmem:[%s2048_s0 + $0x40] sm:$0xff]  ;;  %s1545_s22 = smov [#allocation5]   ;;  %s1254_s24 = sshll.u32 %s2061_s13, 4  ;;  %s1255_s24 = int_to_ptr.hbm [resolvable:$true] %s1254_s24 }
   0xd   :  { %v302_v32 = vunpack.c.l.b16 %v148_v28  ;;  %v150_v42 = vpack.c.bf16 %v118_v38, %v118_v38  ;;  %v285_v43 = vunpack.c.l.b16 %v131_v39  ;;  %v133_v53 = vpack.c.bf16 %v101_v49, %v101_v49  ;;  %v104_v0 = vld [vmem:[%s2048_s0 + $0x48] sm:$0xff]  ;;  %v121_v1 = vld [vmem:[%s2048_s0 + $0xd0] sm:$0xff]  ;;  %v122_v2 = vld [vmem:[%s2048_s0 + $0xd8] sm:$0xff]  ;;  %s1548_s13 = smov [#allocation7]   ;;  %s1267_s27 = sshll.u32 %s2062_s14, 4  ;;  %s1268_s27 = int_to_ptr.hbm [resolvable:$true] %s1267_s27 }
   0xe   :  { %409 = vmatpush.bf16.msra.mxu1 %v1412_v18  ;;  %1437 = vmatpush.bf16.msra.mxu3 %v1412_v18  ;;  %v314_v33 = vpack.c.b16 %v284_v30, %v283_v29  ;;  %v286_v44 = vunpack.c.l.b16 %v132_v40  ;;  %v303_v45 = vunpack.c.l.b16 %v149_v41  ;;  %v134_v54 = vpack.c.bf16 %v102_v50, %v102_v50  ;;  %v105_v13 = vld [vmem:[%s2048_s0 + $0x50] sm:$0xff]  ;;  %v106_v14 = vld [vmem:[%s2048_s0 + $0x58] sm:$0xff]  ;;  %v123_v15 = vld [vmem:[%s2048_s0 + $0xe0] sm:$0xff] }
   0xf   :  { %v323_v34 = vpack.c.b16 %v302_v32, %v301_v31  ;;  %v304_v46 = vunpack.c.l.b16 %v150_v42  ;;  %v151_v55 = vpack.c.bf16 %v119_v51, %v119_v51  ;;  %v152_v56 = vpack.c.bf16 %v120_v52, %v120_v52  ;;  %v124_v16 = vld [vmem:[%s2048_s0 + $0xe8] sm:$0xff]  ;;  %v107_v27 = vld [vmem:[%s2048_s0 + $0x60] sm:$0xff]  ;;  %v125_v29 = vld [vmem:[%s2048_s0 + $0xf0] sm:$0xff] }
  0x10   :  { %v315_v47 = vpack.c.b16 %v286_v44, %v285_v43  ;;  %v287_v57 = vunpack.c.l.b16 %v133_v53  ;;  %v288_v58 = vunpack.c.l.b16 %v134_v54  ;;  %v135_v3 = vpack.c.bf16 %v103_v63, %v103_v63  ;;  %v108_v28 = vld [vmem:[%s2048_s0 + $0x68] sm:$0xff]  ;;  %v126_v30 = vld [vmem:[%s2048_s0 + $0xf8] sm:$0xff]  ;;  %v109_v41 = vld [vmem:[%s2048_s0 + $0x70] sm:$0xff] }
  0x11   :  { %1317 = vmatmul.msk.bf16.vlgmr.msra.gmra.mxu1 %vm353_vm1, %v313_v19  ;;  %1326 = vmatmul.msk.bf16.vlgmr.msra.gmra.mxu3 %vm353_vm1, %v322_v20  ;;  %v324_v48 = vpack.c.b16 %v304_v46, %v303_v45  ;;  %v305_v59 = vunpack.c.l.b16 %v151_v55  ;;  %v306_v60 = vunpack.c.l.b16 %v152_v56  ;;  %v136_v4 = vpack.c.bf16 %v104_v0, %v104_v0  ;;  %v110_v42 = vld [vmem:[%s2048_s0 + $0x78] sm:$0xff]  ;;  %v1417_v43 = vld [vmem:[%s2054_s6 + $0x8] sm:$0xff]  ;;  %v1416_v46 = vld [vmem:[%s2054_s6] sm:$0xff]  ;;  %s1252_s6 = sshll.u32 %s1545_s22, 4  ;;  %s1253_s6 = int_to_ptr.vmem [resolvable:$true] %s1252_s6 }
  0x12   :  { %v316_v61 = vpack.c.b16 %v288_v58, %v287_v57  ;;  %v153_v5 = vpack.c.bf16 %v121_v1, %v121_v1  ;;  %v154_v6 = vpack.c.bf16 %v122_v2, %v122_v2  ;;  %v289_v7 = vunpack.c.l.b16 %v135_v3  ;;  %613 = vmatpush.bf16.msrb.mxu0 %v1417_v43  ;;  %1438 = vmatpush.bf16.msra.mxu2 %v1417_v43  ;;  %v111_v50 = vld [vmem:[%s2048_s0 + $0x80] sm:$0xff]  ;;  %v112_v51 = vld [vmem:[%s2048_s0 + $0x88] sm:$0xff] }
  0x13   :  { %v325_v62 = vpack.c.b16 %v306_v60, %v305_v59  ;;  %v290_v8 = vunpack.c.l.b16 %v136_v4  ;;  %v137_v17 = vpack.c.bf16 %v105_v13, %v105_v13  ;;  %v138_v18 = vpack.c.bf16 %v106_v14, %v106_v14  ;;  %v1769_v59 = vld [vmem:[%s2050_s2] sm:$0xff] }
  0x14   :  { %v307_v9 = vunpack.c.l.b16 %v153_v5  ;;  %v308_v10 = vunpack.c.l.b16 %v154_v6  ;;  %v155_v19 = vpack.c.bf16 %v123_v15, %v123_v15  ;;  %v156_v20 = vpack.c.bf16 %v124_v16, %v124_v16 }
  0x15   :  { %v317_v11 = vpack.c.b16 %v290_v8, %v289_v7  ;;  %v291_v21 = vunpack.c.l.b16 %v137_v17  ;;  %v292_v22 = vunpack.c.l.b16 %v138_v18  ;;  %v139_v31 = vpack.c.bf16 %v107_v27, %v107_v27 }
  0x16   :  { %v326_v12 = vpack.c.b16 %v308_v10, %v307_v9  ;;  %v309_v23 = vunpack.c.l.b16 %v155_v19  ;;  %v310_v24 = vunpack.c.l.b16 %v156_v20  ;;  %v140_v32 = vpack.c.bf16 %v108_v28, %v108_v28  ;;  %614 = vmatpush.bf16.msrb.mxu0 %v1416_v46  ;;  %1439 = vmatpush.bf16.msra.mxu2 %v1416_v46 }
  0x17   :  { %v318_v25 = vpack.c.b16 %v292_v22, %v291_v21  ;;  %v293_v35 = vunpack.c.l.b16 %v139_v31  ;;  %v141_v44 = vpack.c.bf16 %v109_v41, %v109_v41  ;;  %v142_v45 = vpack.c.bf16 %v110_v42, %v110_v42 }
  0x18   :  { %v327_v26 = vpack.c.b16 %v310_v24, %v309_v23  ;;  %v294_v36 = vunpack.c.l.b16 %v140_v32  ;;  %v143_v52 = vpack.c.bf16 %v111_v50, %v111_v50  ;;  %v144_v53 = vpack.c.bf16 %v112_v51, %v112_v51 }
  0x19   :  { %vm957_vm4 = vcmask 1042434   ;;  %vm959_vm5 = vcmask 1043459   ;;  %vm961_vm6 = vcmask 1044484   ;;  %vm963_vm7 = vcmask 1045509  }
  0x1a   :  { %v319_v39 = vpack.c.b16 %v294_v36, %v293_v35  ;;  %v297_v54 = vunpack.c.l.b16 %v143_v52  ;;  %v298_v55 = vunpack.c.l.b16 %v144_v53  ;;  %vm965_vm8 = vcmask 1046534  }
  0x1b   :  { %vm967_vm9 = vcmask 1047559  }
  0x1c   :  { %v321_v58 = vpack.c.b16 %v298_v55, %v297_v54 }
  0x21   :  { %1318 = vmatmul.msk.bf16.gmra.mxu1 %vm353_vm1, %v314_v33  ;;  %1327 = vmatmul.msk.bf16.gmra.mxu3 %vm353_vm1, %v323_v34  ;;  %v157_v33 = vpack.c.bf16 %v125_v29, %v125_v29  ;;  %v158_v34 = vpack.c.bf16 %v126_v30, %v126_v30 }
  0x23   :  { %v311_v37 = vunpack.c.l.b16 %v157_v33  ;;  %v312_v38 = vunpack.c.l.b16 %v158_v34 }
  0x25   :  { %v328_v40 = vpack.c.b16 %v312_v38, %v311_v37 }
  0x31   :  { %1319 = vmatmul.msk.bf16.gmra.mxu1 %vm353_vm1, %v315_v47  ;;  %1328 = vmatmul.msk.bf16.gmra.mxu3 %vm353_vm1, %v324_v48  ;;  %v295_v47 = vunpack.c.l.b16 %v141_v44  ;;  %v296_v48 = vunpack.c.l.b16 %v142_v45 }
  0x33   :  { %v320_v49 = vpack.c.b16 %v296_v48, %v295_v47 }
  0x41   :  { %1320 = vmatmul.msk.bf16.gmra.mxu1 %vm353_vm1, %v316_v61  ;;  %1329 = vmatmul.msk.bf16.gmra.mxu3 %vm353_vm1, %v325_v62  ;;  %v1774_v61 = vld [vmem:[%s2050_s2 + $0x8] sm:$0xff]  ;;  %s1546_s2 = smov 128  }
  0x51   :  { %1321 = vmatmul.msk.bf16.gmra.mxu1 %vm353_vm1, %v317_v11  ;;  %1330 = vmatmul.msk.bf16.gmra.mxu3 %vm353_vm1, %v326_v12 }
  0x61   :  { %1322 = vmatmul.msk.bf16.gmra.mxu1 %vm353_vm1, %v318_v25  ;;  %1331 = vmatmul.msk.bf16.gmra.mxu3 %vm353_vm1, %v327_v26 }
  0x71   :  { %1323 = vmatmul.msk.bf16.gmra.mxu1 %vm353_vm1, %v319_v39  ;;  %1332 = vmatmul.msk.bf16.gmra.mxu3 %vm353_vm1, %v328_v40 }
  0x81   :  { %1324 = vmatmul.msk.bf16.gmra.mxu1 %vm353_vm1, %v320_v49 }
  0x88   :  { %v1763_v56 = vpop.f32.mrf.mxu0 }
  0x89   :  { %v185_v57 = vperm.slane %v1763_v56, 0  ;;  %v169_v5 = vrot.slane %v1763_v56, 1  ;;  %v170_v16 = vrot.slane %v1763_v56, 2  ;;  %v171_v27 = vrot.slane %v1763_v56, 3 }
  0x8a   :  { %v172_v38 = vrot.slane %v1763_v56, 4  ;;  %v173_v49 = vrot.slane %v1763_v56, 5 }
  0x8b   :  { %v217_v62 = vadd.f32 %v185_v57, %v1769_v59  ;;  %v218_v63 = vadd.f32 %v185_v57, %v1774_v61  ;;  %v186_v7 = vperm.slane %v169_v5, 0  ;;  %v187_v18 = vperm.slane %v170_v16, 0 }
  0x8c   :  { %v188_v29 = vperm.slane %v171_v27, 0  ;;  %v189_v40 = vperm.slane %v172_v38, 0  ;;  %v190_v51 = vperm.slane %v173_v49, 0 }
  0x8d   :  { %v219_v9 = vadd.f32 %v186_v7, %v1769_v59  ;;  %v220_v10 = vadd.f32 %v186_v7, %v1774_v61  ;;  %v221_v20 = vadd.f32 %v187_v18, %v1769_v59  ;;  %v222_v21 = vadd.f32 %v187_v18, %v1774_v61 }
  0x8e   :  { %v411_v60 = vpop.f32.mrf.mxu1  ;;  %v223_v31 = vadd.f32 %v188_v29, %v1769_v59  ;;  %v224_v32 = vadd.f32 %v188_v29, %v1774_v61  ;;  %v225_v42 = vadd.f32 %v189_v40, %v1769_v59  ;;  %v226_v43 = vadd.f32 %v189_v40, %v1774_v61 }
  0x8f   :  { %v412_v0 = vadd.f32 %v411_v60, %v217_v62  ;;  %v227_v53 = vadd.f32 %v190_v51, %v1769_v59  ;;  %v228_v54 = vadd.f32 %v190_v51, %v1774_v61 }
  0x91   :  { %1325 = vmatmul.msk.bf16.gmra.mxu1 %vm353_vm1, %v321_v58  ;;  %v491_v3 = vmax.f32 %v412_v0, 0.0 }
  0x96   :  { %v413_v1 = vpop.f32.mrf.mxu1 }
  0x97   :  { %v414_v2 = vadd.f32 %v413_v1, %v218_v63  ;;  %v174_v63 = vrot.slane %v1763_v56, 6 }
  0x99   :  { %v492_v4 = vmax.f32 %v414_v2, 0.0  ;;  %v191_v1 = vperm.slane %v174_v63, 0 }
  0x9b   :  { %v523_v6 = vpack.c.bf16 %v492_v4, %v491_v3  ;;  %v229_v3 = vadd.f32 %v191_v1, %v1769_v59  ;;  %v230_v4 = vadd.f32 %v191_v1, %v1774_v61 }
  0x9d   :  { %1341 = vmatmul.msk.bf16.vlgmr.msrb.gmra.mxu0 %vm51_vm0, %v523_v6 }
  0x9e   :  { %v416_v8 = vpop.f32.mrf.mxu1 }
  0x9f   :  { %v417_v11 = vadd.f32 %v416_v8, %v219_v9 }
  0xa1   :  { %v493_v14 = vmax.f32 %v417_v11, 0.0  ;;  %v175_v11 = vrot.slane %v1763_v56, 7 }
  0xa6   :  { %v418_v12 = vpop.f32.mrf.mxu1 }
  0xa7   :  { %v419_v13 = vadd.f32 %v418_v12, %v220_v10  ;;  %v456_v12 = vpop.f32.mrf.mxu3 }
  0xa9   :  { %v494_v15 = vmax.f32 %v419_v13, 0.0 }
  0xab   :  { %v524_v17 = vpack.c.bf16 %v494_v15, %v493_v14  ;;  %v192_v14 = vperm.slane %v175_v11, 0 }
  0xad   :  { %1342 = vmatmul.msk.bf16.gmra.mxu0 %vm51_vm0, %v524_v17  ;;  %v231_v15 = vadd.f32 %v192_v14, %v1769_v59  ;;  %v232_v17 = vadd.f32 %v192_v14, %v1774_v61 }
  0xae   :  { %v421_v19 = vpop.f32.mrf.mxu1 }
  0xaf   :  { %v422_v22 = vadd.f32 %v421_v19, %v221_v20  ;;  %v458_v20 = vpop.f32.mrf.mxu3 }
  0xb1   :  { %v495_v25 = vmax.f32 %v422_v22, 0.0 }
  0xb6   :  { %v423_v23 = vpop.f32.mrf.mxu1 }
  0xb7   :  { %v424_v24 = vadd.f32 %v423_v23, %v222_v21 }
  0xb9   :  { %v496_v26 = vmax.f32 %v424_v24, 0.0  ;;  %v1807_v24 = vpop.f32.mrf.mxu0 }
  0xbb   :  { %v525_v28 = vpack.c.bf16 %v496_v26, %v495_v25  ;;  %v193_v25 = vperm.slane %v1807_v24, 0  ;;  %v461_v26 = vpop.f32.mrf.mxu3 }
  0xbd   :  { %1343 = vmatmul.msk.bf16.gmra.mxu0 %vm51_vm0, %v525_v28  ;;  %v233_v27 = vadd.f32 %v193_v25, %v1769_v59  ;;  %v234_v29 = vadd.f32 %v193_v25, %v1774_v61 }
  0xbe   :  { %v426_v30 = vpop.f32.mrf.mxu1 }
  0xbf   :  { %v427_v33 = vadd.f32 %v426_v30, %v223_v31  ;;  %v176_v31 = vrot.slane %v1807_v24, 1 }
  0xc1   :  { %v497_v36 = vmax.f32 %v427_v33, 0.0  ;;  %v1817_v33 = vld [vmem:[%s2055_s7] ss:$0 sm:$0xff]  ;;  %s1547_s7 = smov 8  }
  0xc3   :  { %v463_v40 = vpop.f32.mrf.mxu3 }
  0xc6   :  { %v428_v34 = vpop.f32.mrf.mxu1 }
  0xc7   :  { %v429_v35 = vadd.f32 %v428_v34, %v224_v32 }
  0xc9   :  { %v498_v37 = vmax.f32 %v429_v35, 0.0 }
  0xcb   :  { %v526_v39 = vpack.c.bf16 %v498_v37, %v497_v36  ;;  %v194_v37 = vperm.slane %v176_v31, 0 }
  0xcd   :  { %1344 = vmatmul.msk.bf16.gmra.mxu0 %vm51_vm0, %v526_v39 }
  0xce   :  { %v431_v41 = vpop.f32.mrf.mxu1 }
  0xcf   :  { %v432_v44 = vadd.f32 %v431_v41, %v225_v42  ;;  %v235_v42 = vadd.f32 %v194_v37, %v1769_v59 }
  0xd1   :  { %v499_v47 = vmax.f32 %v432_v44, 0.0  ;;  %v236_v44 = vadd.f32 %v194_v37, %v1774_v61 }
  0xd6   :  { %v433_v45 = vpop.f32.mrf.mxu1 }
  0xd7   :  { %v434_v46 = vadd.f32 %v433_v45, %v226_v43 }
  0xd9   :  { %v500_v48 = vmax.f32 %v434_v46, 0.0  ;;  %v457_v46 = vadd.f32 %v456_v12, %v235_v42 }
  0xdb   :  { %v527_v50 = vpack.c.bf16 %v500_v48, %v499_v47  ;;  %v459_v48 = vadd.f32 %v458_v20, %v236_v44  ;;  %v509_v51 = vmax.f32 %v457_v46, 0.0 }
  0xdd   :  { %1345 = vmatmul.msk.bf16.gmra.mxu0 %vm51_vm0, %v527_v50  ;;  %v466_v50 = vpop.f32.mrf.mxu3 }
  0xde   :  { %v436_v52 = vpop.f32.mrf.mxu1 }
  0xdf   :  { %v437_v55 = vadd.f32 %v436_v52, %v227_v53  ;;  %v177_v52 = vrot.slane %v1807_v24, 2 }
  0xe1   :  { %v501_v60 = vmax.f32 %v437_v55, 0.0 }
  0xe6   :  { %v438_v57 = vpop.f32.mrf.mxu1 }
  0xe7   :  { %v439_v58 = vadd.f32 %v438_v57, %v228_v54  ;;  %v510_v57 = vmax.f32 %v459_v48, 0.0 }
  0xe9   :  { %v502_v62 = vmax.f32 %v439_v58, 0.0  ;;  %v532_v63 = vpack.c.bf16 %v510_v57, %v509_v51 }
  0xeb   :  { %v528_v0 = vpack.c.bf16 %v502_v62, %v501_v60 }
  0xed   :  { %1346 = vmatmul.msk.bf16.gmra.mxu0 %vm51_vm0, %v528_v0  ;;  %v195_v0 = vperm.slane %v177_v52, 0  ;;  %v179_v52 = vrot.slane %v1807_v24, 4 }
  0xee   :  { %v441_v2 = vpop.f32.mrf.mxu1 }
  0xef   :  { %v442_v5 = vadd.f32 %v441_v2, %v229_v3 }
  0xf1   :  { %v503_v8 = vmax.f32 %v442_v5, 0.0  ;;  %v238_v5 = vadd.f32 %v195_v0, %v1774_v61 }
  0xf3   :  { %v464_v12 = vadd.f32 %v463_v40, %v238_v5 }
  0xf6   :  { %v443_v6 = vpop.f32.mrf.mxu1 }
  0xf7   :  { %v444_v7 = vadd.f32 %v443_v6, %v230_v4  ;;  %v237_v4 = vadd.f32 %v195_v0, %v1769_v59  ;;  %v468_v6 = vpop.f32.mrf.mxu3 }
  0xf9   :  { %v504_v9 = vmax.f32 %v444_v7, 0.0  ;;  %v462_v11 = vadd.f32 %v461_v26, %v237_v4 }
  0xfb   :  { %v529_v10 = vpack.c.bf16 %v504_v9, %v503_v8 }
  0xfd   :  { %1347 = vmatmul.msk.bf16.vlgmr.msra.gmra.mxu2 %vm51_vm0, %v529_v10 }
  0xfe   :  { %v446_v13 = vpop.f32.mrf.mxu1 }
  0xff   :  { %v447_v16 = vadd.f32 %v446_v13, %v231_v15  ;;  %v178_v15 = vrot.slane %v1807_v24, 3 }
 0x101   :  { %v505_v21 = vmax.f32 %v447_v16, 0.0 }
 0x106   :  { %v448_v18 = vpop.f32.mrf.mxu1 }
 0x107   :  { %v449_v19 = vadd.f32 %v448_v18, %v232_v17  ;;  %v511_v18 = vmax.f32 %v462_v11, 0.0 }
 0x109   :  { %v506_v22 = vmax.f32 %v449_v19, 0.0  ;;  %v512_v19 = vmax.f32 %v464_v12, 0.0 }
 0x10b   :  { %v530_v23 = vpack.c.bf16 %v506_v22, %v505_v21 }
 0x10d   :  { %1348 = vmatmul.msk.bf16.gmra.mxu2 %vm51_vm0, %v530_v23  ;;  %v471_v23 = vpop.f32.mrf.mxu3 }
 0x10e   :  { %v451_v56 = vpop.f32.mrf.mxu1 }
 0x10f   :  { %v452_v28 = vadd.f32 %v451_v56, %v233_v27  ;;  %v533_v27 = vpack.c.bf16 %v512_v19, %v511_v18  ;;  %v180_v19 = vrot.slane %v1807_v24, 5 }
 0x111   :  { %v507_v34 = vmax.f32 %v452_v28, 0.0  ;;  %v196_v28 = vperm.slane %v178_v15, 0 }
 0x113   :  { %v240_v37 = vadd.f32 %v196_v28, %v1774_v61 }
 0x115   :  { %v473_v46 = vpop.f32.mrf.mxu3 }
 0x116   :  { %v453_v30 = vpop.f32.mrf.mxu1 }
 0x117   :  { %v454_v32 = vadd.f32 %v453_v30, %v234_v29 }
 0x119   :  { %v508_v35 = vmax.f32 %v454_v32, 0.0 }
 0x11a   :  { %v616_v36 = vpop.f32.mrf.mxu0 }
 0x11b   :  { %v531_v38 = vpack.c.bf16 %v508_v35, %v507_v34  ;;  %v617_v39 = vadd.f32 %v1817_v33, %v616_v36  ;;  %v239_v36 = vadd.f32 %v196_v28, %v1769_v59 }
 0x11d   :  { %v696_v41 = vmax.f32 %v617_v39, 0.0  ;;  %1349 = vmatmul.msk.bf16.gmra.mxu2 %vm51_vm0, %v531_v38  ;;  %v467_v44 = vadd.f32 %v466_v50, %v239_v36  ;;  %v476_v4 = vpop.f32.mrf.mxu3 }
 0x11f   :  { %v728_v43 = vpack.c.bf16 %v696_v41, %v696_v41  ;;  %v793_v53 = vsel %vm51_vm0, %v696_v41, 0.0 }
 0x121   :  { %761 = vst.msk [vmem:[#allocation3] sm:$0xf] %vm760_vm2, %v728_v43 }
 0x122   :  { %v618_v45 = vpop.f32.mrf.mxu0 }
 0x123   :  { %v619_v47 = vadd.f32 %v1817_v33, %v618_v45  ;;  %v469_v45 = vadd.f32 %v468_v6, %v240_v37 }
 0x125   :  { %v697_v49 = vmax.f32 %v619_v47, 0.0  ;;  %v514_v57 = vmax.f32 %v469_v45, 0.0 }
 0x127   :  { %v729_v54 = vpack.c.bf16 %v697_v49, %v697_v49  ;;  %v794_v55 = vsel %vm51_vm0, %v697_v49, 0.0 }
 0x128   :  { %v795_v58 = vadd.f32 %v794_v55, %v793_v53 }
 0x129   :  { %762 = vst.msk [vmem:[#allocation3 + $0x4] sm:$0xf] %vm760_vm2, %v729_v54 }
 0x12a   :  { %v621_v60 = vpop.f32.mrf.mxu0  ;;  %v796_v7 = vrot.slane %v795_v58, 4 }
 0x12b   :  { %v622_v62 = vadd.f32 %v1817_v33, %v621_v60 }
 0x12c   :  { %v797_v13 = vadd.f32 %v796_v7, %v795_v58 }
 0x12d   :  { %v698_v1 = vmax.f32 %v622_v62, 0.0  ;;  %1350 = vmatmul.msk.bf16.gmra.mxu2 %vm51_vm0, %v532_v63 }
 0x12e   :  { %v798_v20 = vrot.slane %v797_v13, 2 }
 0x12f   :  { %v730_v2 = vpack.c.bf16 %v698_v1, %v698_v1  ;;  %v802_v3 = vsel %vm51_vm0, %v698_v1, 0.0  ;;  %v197_v1 = vperm.slane %v179_v52, 0  ;;  %v181_v52 = vrot.slane %v1807_v24, 6 }
 0x130   :  { %v1082_v8 = vadd.f32 %v802_v3, %v793_v53  ;;  %v799_v29 = vadd.f32 %v798_v20, %v797_v13 }
 0x131   :  { %763 = vst.msk [vmem:[#allocation3 + $0x8] sm:$0xf] %vm760_vm2, %v730_v2 }
 0x132   :  { %v623_v9 = vpop.f32.mrf.mxu0  ;;  %v800_v38 = vrot.slane %v799_v29, 1 }
 0x133   :  { %v624_v10 = vadd.f32 %v1817_v33, %v623_v9  ;;  %v242_v9 = vadd.f32 %v197_v1, %v1774_v61 }
 0x134   :  { %v801_v47 = vadd.f32 %v800_v38, %v799_v29 }
 0x135   :  { %v699_v14 = vmax.f32 %v624_v10, 0.0 }
 0x137   :  { %v731_v16 = vpack.c.bf16 %v699_v14, %v699_v14  ;;  %v803_v17 = vsel %vm51_vm0, %v699_v14, 0.0 }
 0x138   :  { %v804_v21 = vadd.f32 %v803_v17, %v802_v3  ;;  %v1097_v22 = vadd.f32 %v803_v17, %v794_v55  ;;  %v513_v55 = vmax.f32 %v467_v44, 0.0 }
 0x139   :  { %764 = vst.msk [vmem:[#allocation3 + $0xc] sm:$0xf] %vm760_vm2, %v731_v16  ;;  %v474_v16 = vadd.f32 %v473_v46, %v242_v9 }
 0x13a   :  { %v805_v56 = vrot.slane %v804_v21, 4  ;;  %v626_v25 = vpop.f32.mrf.mxu0  ;;  %v534_v0 = vpack.c.bf16 %v514_v57, %v513_v55 }
 0x13b   :  { %v627_v26 = vadd.f32 %v1817_v33, %v626_v25  ;;  %v516_v25 = vmax.f32 %v474_v16, 0.0 }
 0x13c   :  { %v806_v30 = vadd.f32 %v805_v56, %v804_v21 }
 0x13d   :  { %v700_v31 = vmax.f32 %v627_v26, 0.0  ;;  %1351 = vmatmul.msk.bf16.gmra.mxu2 %vm51_vm0, %v533_v27  ;;  %v478_v26 = vpop.f32.mrf.mxu3 }
 0x13e   :  { %v807_v32 = vrot.slane %v806_v30, 2 }
 0x13f   :  { %v732_v34 = vpack.c.bf16 %v700_v31, %v700_v31  ;;  %v811_v35 = vsel %vm51_vm0, %v700_v31, 0.0 }
 0x140   :  { %v808_v39 = vadd.f32 %v807_v32, %v806_v30  ;;  %v1083_v40 = vadd.f32 %v1082_v8, %v811_v35  ;;  %v241_v8 = vadd.f32 %v197_v1, %v1769_v59  ;;  %v198_v32 = vperm.slane %v180_v19, 0 }
 0x141   :  { %765 = vst.msk [vmem:[#allocation3 + $0x10] sm:$0xf] %vm760_vm2, %v732_v34 }
 0x142   :  { %v809_v41 = vrot.slane %v808_v39, 1  ;;  %v628_v42 = vpop.f32.mrf.mxu0  ;;  %v472_v15 = vadd.f32 %v471_v23, %v241_v8 }
 0x143   :  { %v629_v43 = vadd.f32 %v1817_v33, %v628_v42 }
 0x144   :  { %v810_v48 = vadd.f32 %v809_v41, %v808_v39  ;;  %v515_v56 = vmax.f32 %v472_v15, 0.0  ;;  %v243_v39 = vadd.f32 %v198_v32, %v1769_v59 }
 0x145   :  { %v701_v49 = vmax.f32 %v629_v43, 0.0  ;;  %v481_v43 = vpop.f32.mrf.mxu3 }
 0x146   :  { %v956_v51 = vsel %vm955_vm3, %v810_v48, %v801_v47  ;;  %v535_v31 = vpack.c.bf16 %v516_v25, %v515_v56  ;;  %v477_v47 = vadd.f32 %v476_v4, %v243_v39 }
 0x147   :  { %v733_v53 = vpack.c.bf16 %v701_v49, %v701_v49  ;;  %v812_v54 = vsel %vm51_vm0, %v701_v49, 0.0 }
 0x148   :  { %v813_v58 = vadd.f32 %v812_v54, %v811_v35  ;;  %v1098_v60 = vadd.f32 %v1097_v22, %v812_v54  ;;  %v517_v57 = vmax.f32 %v477_v47, 0.0 }
 0x149   :  { %766 = vst.msk [vmem:[#allocation3 + $0x14] sm:$0xf] %vm760_vm2, %v733_v53 }
 0x14a   :  { %v814_v62 = vrot.slane %v813_v58, 4  ;;  %v631_v50 = vpop.f32.mrf.mxu0 }
 0x14b   :  { %v632_v63 = vadd.f32 %v1817_v33, %v631_v50 }
 0x14c   :  { %v815_v2 = vadd.f32 %v814_v62, %v813_v58 }
 0x14d   :  { %v702_v3 = vmax.f32 %v632_v63, 0.0  ;;  %1352 = vmatmul.msk.bf16.gmra.mxu2 %vm51_vm0, %v534_v0 }
 0x14e   :  { %v816_v5 = vrot.slane %v815_v2, 2 }
 0x14f   :  { %v734_v6 = vpack.c.bf16 %v702_v3, %v702_v3  ;;  %v820_v7 = vsel %vm51_vm0, %v702_v3, 0.0  ;;  %v483_v3 = vpop.f32.mrf.mxu3 }
 0x150   :  { %v817_v10 = vadd.f32 %v816_v5, %v815_v2  ;;  %v1084_v11 = vadd.f32 %v1083_v40, %v820_v7  ;;  %v244_v40 = vadd.f32 %v198_v32, %v1774_v61  ;;  %v199_v2 = vperm.slane %v181_v52, 0 }
 0x151   :  { %767 = vst.msk [vmem:[#allocation3 + $0x18] sm:$0xf] %vm760_vm2, %v734_v6 }
 0x152   :  { %v818_v12 = vrot.slane %v817_v10, 1  ;;  %v633_v13 = vpop.f32.mrf.mxu0  ;;  %v479_v48 = vadd.f32 %v478_v26, %v244_v40  ;;  %v245_v9 = vadd.f32 %v199_v2, %v1769_v59 }
 0x153   :  { %v634_v14 = vadd.f32 %v1817_v33, %v633_v13 }
 0x154   :  { %v819_v17 = vadd.f32 %v818_v12, %v817_v10  ;;  %v518_v58 = vmax.f32 %v479_v48, 0.0  ;;  %v246_v10 = vadd.f32 %v199_v2, %v1774_v61  ;;  %v482_v16 = vadd.f32 %v481_v43, %v245_v9 }
 0x155   :  { %v703_v18 = vmax.f32 %v634_v14, 0.0 }
 0x156   :  { %v958_v20 = vsel %vm957_vm4, %v819_v17, %v956_v51  ;;  %v536_v1 = vpack.c.bf16 %v518_v58, %v517_v57  ;;  %v484_v17 = vadd.f32 %v483_v3, %v246_v10  ;;  %v519_v25 = vmax.f32 %v482_v16, 0.0 }
 0x157   :  { %v735_v21 = vpack.c.bf16 %v703_v18, %v703_v18  ;;  %v821_v22 = vsel %vm51_vm0, %v703_v18, 0.0 }
 0x158   :  { %v822_v27 = vadd.f32 %v821_v22, %v820_v7  ;;  %v1099_v28 = vadd.f32 %v1098_v60, %v821_v22  ;;  %v520_v26 = vmax.f32 %v484_v17, 0.0 }
 0x159   :  { %768 = vst.msk [vmem:[#allocation3 + $0x1c] sm:$0xf] %vm760_vm2, %v735_v21 }
 0x15a   :  { %v823_v29 = vrot.slane %v822_v27, 4  ;;  %v636_v23 = vpop.f32.mrf.mxu0 }
 0x15b   :  { %v637_v30 = vadd.f32 %v1817_v33, %v636_v23 }
 0x15c   :  { %v824_v34 = vadd.f32 %v823_v29, %v822_v27  ;;  %v182_v29 = vrot.slane %v1807_v24, 7 }
 0x15d   :  { %v704_v35 = vmax.f32 %v637_v30, 0.0  ;;  %1353 = vmatmul.msk.bf16.gmra.mxu2 %vm51_vm0, %v535_v31  ;;  %v537_v30 = vpack.c.bf16 %v520_v26, %v519_v25 }
 0x15e   :  { %v825_v36 = vrot.slane %v824_v34, 2  ;;  %v200_v32 = vperm.slane %v182_v29, 0 }
 0x15f   :  { %v736_v37 = vpack.c.bf16 %v704_v35, %v704_v35  ;;  %v829_v38 = vsel %vm51_vm0, %v704_v35, 0.0 }
 0x160   :  { %v826_v41 = vadd.f32 %v825_v36, %v824_v34  ;;  %v1085_v42 = vadd.f32 %v1084_v11, %v829_v38  ;;  %v248_v39 = vadd.f32 %v200_v32, %v1774_v61 }
 0x161   :  { %769 = vst.msk [vmem:[#allocation3 + $0x20] sm:$0xf] %vm760_vm2, %v736_v37 }
 0x162   :  { %v827_v44 = vrot.slane %v826_v41, 1  ;;  %v638_v45 = vpop.f32.mrf.mxu0 }
 0x163   :  { %v639_v46 = vadd.f32 %v1817_v33, %v638_v45 }
 0x164   :  { %v828_v49 = vadd.f32 %v827_v44, %v826_v41 }
 0x165   :  { %v705_v51 = vmax.f32 %v639_v46, 0.0 }
 0x166   :  { %v960_v53 = vsel %vm959_vm5, %v828_v49, %v958_v20  ;;  %v486_v20 = vpop.f32.mrf.mxu3 }
 0x167   :  { %v737_v54 = vpack.c.bf16 %v705_v51, %v705_v51  ;;  %v830_v55 = vsel %vm51_vm0, %v705_v51, 0.0 }
 0x168   :  { %v831_v60 = vadd.f32 %v830_v55, %v829_v38  ;;  %v1100_v62 = vadd.f32 %v1099_v28, %v830_v55  ;;  %v247_v38 = vadd.f32 %v200_v32, %v1769_v59 }
 0x169   :  { %770 = vst.msk [vmem:[#allocation3 + $0x24] sm:$0xf] %vm760_vm2, %v737_v54 }
 0x16a   :  { %v832_v50 = vrot.slane %v831_v60, 4  ;;  %v641_v63 = vpop.f32.mrf.mxu0  ;;  %v487_v44 = vadd.f32 %v486_v20, %v247_v38 }
 0x16b   :  { %v642_v0 = vadd.f32 %v1817_v33, %v641_v63 }
 0x16c   :  { %v833_v4 = vadd.f32 %v832_v50, %v831_v60  ;;  %v521_v51 = vmax.f32 %v487_v44, 0.0 }
 0x16d   :  { %v706_v5 = vmax.f32 %v642_v0, 0.0  ;;  %1354 = vmatmul.msk.bf16.gmra.mxu2 %vm51_vm0, %v536_v1 }
 0x16e   :  { %v834_v6 = vrot.slane %v833_v4, 2  ;;  %v488_v35 = vpop.f32.mrf.mxu3 }
 0x16f   :  { %v738_v7 = vpack.c.bf16 %v706_v5, %v706_v5  ;;  %v838_v8 = vsel %vm51_vm0, %v706_v5, 0.0  ;;  %v489_v24 = vadd.f32 %v488_v35, %v248_v39 }
 0x170   :  { %v835_v11 = vadd.f32 %v834_v6, %v833_v4  ;;  %v1086_v12 = vadd.f32 %v1085_v42, %v838_v8 }
 0x171   :  { %771 = vst.msk [vmem:[#allocation3 + $0x28] sm:$0xf] %vm760_vm2, %v738_v7  ;;  %v522_v49 = vmax.f32 %v489_v24, 0.0 }
 0x172   :  { %v836_v13 = vrot.slane %v835_v11, 1  ;;  %v643_v14 = vpop.f32.mrf.mxu0 }
 0x173   :  { %v644_v15 = vadd.f32 %v1817_v33, %v643_v14  ;;  %v538_v52 = vpack.c.bf16 %v522_v49, %v521_v51 }
 0x174   :  { %v837_v18 = vadd.f32 %v836_v13, %v835_v11 }
 0x175   :  { %v707_v19 = vmax.f32 %v644_v15, 0.0 }
 0x176   :  { %v962_v21 = vsel %vm961_vm6, %v837_v18, %v960_v53 }
 0x177   :  { %v739_v22 = vpack.c.bf16 %v707_v19, %v707_v19  ;;  %v839_v56 = vsel %vm51_vm0, %v707_v19, 0.0 }
 0x178   :  { %v840_v27 = vadd.f32 %v839_v56, %v838_v8  ;;  %v1101_v28 = vadd.f32 %v1100_v62, %v839_v56 }
 0x179   :  { %772 = vst.msk [vmem:[#allocation3 + $0x2c] sm:$0xf] %vm760_vm2, %v739_v22 }
 0x17a   :  { %v841_v23 = vrot.slane %v840_v27, 4 }
 0x17c   :  { %v842_v31 = vadd.f32 %v841_v23, %v840_v27 }
 0x17d   :  { %1355 = vmatmul.msk.bf16.gmra.mxu2 %vm51_vm0, %v537_v30 }
 0x17e   :  { %v843_v34 = vrot.slane %v842_v31, 2 }
 0x180   :  { %v844_v36 = vadd.f32 %v843_v34, %v842_v31  ;;  %v646_v37 = vpop.f32.mrf.mxu2 }
 0x181   :  { %v647_v40 = vadd.f32 %v1817_v33, %v646_v37 }
 0x182   :  { %v845_v41 = vrot.slane %v844_v36, 1 }
 0x183   :  { %v708_v42 = vmax.f32 %v647_v40, 0.0 }
 0x184   :  { %v846_v43 = vadd.f32 %v845_v41, %v844_v36 }
 0x185   :  { %v740_v45 = vpack.c.bf16 %v708_v42, %v708_v42  ;;  %v847_v46 = vsel %vm51_vm0, %v708_v42, 0.0 }
 0x186   :  { %v1087_v47 = vadd.f32 %v1086_v12, %v847_v46  ;;  %v964_v48 = vsel %vm963_vm7, %v846_v43, %v962_v21 }
 0x187   :  { %773 = vst.msk [vmem:[#allocation3 + $0x30] sm:$0xf] %vm760_vm2, %v740_v45 }
 0x188   :  { %v648_v59 = vpop.f32.mrf.mxu2 }
 0x189   :  { %v649_v61 = vadd.f32 %v1817_v33, %v648_v59 }
 0x18b   :  { %v709_v53 = vmax.f32 %v649_v61, 0.0 }
 0x18d   :  { %v741_v54 = vpack.c.bf16 %v709_v53, %v709_v53  ;;  %v848_v55 = vsel %vm51_vm0, %v709_v53, 0.0  ;;  %1356 = vmatmul.msk.bf16.gmra.mxu2 %vm51_vm0, %v538_v52 }
 0x18e   :  { %v849_v57 = vadd.f32 %v848_v55, %v847_v46  ;;  %v1102_v58 = vadd.f32 %v1101_v28, %v848_v55 }
 0x18f   :  { %774 = vst.msk [vmem:[#allocation3 + $0x34] sm:$0xf] %vm760_vm2, %v741_v54 }
 0x190   :  { %v850_v60 = vrot.slane %v849_v57, 4  ;;  %v651_v62 = vpop.f32.mrf.mxu2 }
 0x191   :  { %v652_v50 = vadd.f32 %v1817_v33, %v651_v62 }
 0x192   :  { %v851_v63 = vadd.f32 %v850_v60, %v849_v57 }
 0x193   :  { %v710_v0 = vmax.f32 %v652_v50, 0.0 }
 0x194   :  { %v852_v1 = vrot.slane %v851_v63, 2 }
 0x195   :  { %v742_v2 = vpack.c.bf16 %v710_v0, %v710_v0  ;;  %v856_v3 = vsel %vm51_vm0, %v710_v0, 0.0 }
 0x196   :  { %v853_v4 = vadd.f32 %v852_v1, %v851_v63  ;;  %v1088_v5 = vadd.f32 %v1087_v47, %v856_v3 }
 0x197   :  { %775 = vst.msk [vmem:[#allocation3 + $0x38] sm:$0xf] %vm760_vm2, %v742_v2 }
 0x198   :  { %v854_v6 = vrot.slane %v853_v4, 1  ;;  %v653_v7 = vpop.f32.mrf.mxu2 }
 0x199   :  { %v654_v8 = vadd.f32 %v1817_v33, %v653_v7 }
 0x19a   :  { %v855_v9 = vadd.f32 %v854_v6, %v853_v4 }
 0x19b   :  { %v711_v10 = vmax.f32 %v654_v8, 0.0 }
 0x19c   :  { %v966_v11 = vsel %vm965_vm8, %v855_v9, %v964_v48 }
 0x19d   :  { %v743_v12 = vpack.c.bf16 %v711_v10, %v711_v10  ;;  %v857_v13 = vsel %vm51_vm0, %v711_v10, 0.0 }
 0x19e   :  { %v858_v14 = vadd.f32 %v857_v13, %v856_v3  ;;  %v1103_v15 = vadd.f32 %v1102_v58, %v857_v13 }
 0x19f   :  { %776 = vst.msk [vmem:[#allocation3 + $0x3c] sm:$0xf] %vm760_vm2, %v743_v12 }
 0x1a0   :  { %v859_v16 = vrot.slane %v858_v14, 4  ;;  %v656_v17 = vpop.f32.mrf.mxu2 }
 0x1a1   :  { %v657_v18 = vadd.f32 %v1817_v33, %v656_v17 }
 0x1a2   :  { %v860_v19 = vadd.f32 %v859_v16, %v858_v14 }
 0x1a3   :  { %v712_v20 = vmax.f32 %v657_v18, 0.0 }
 0x1a4   :  { %v861_v21 = vrot.slane %v860_v19, 2 }
 0x1a5   :  { %v744_v22 = vpack.c.bf16 %v712_v20, %v712_v20  ;;  %v865_v56 = vsel %vm51_vm0, %v712_v20, 0.0 }
 0x1a6   :  { %v862_v25 = vadd.f32 %v861_v21, %v860_v19  ;;  %v1089_v26 = vadd.f32 %v1088_v5, %v865_v56 }
 0x1a7   :  { %777 = vst.msk [vmem:[#allocation3 + $0x40] sm:$0xf] %vm760_vm2, %v744_v22 }
 0x1a8   :  { %v658_v27 = vpop.f32.mrf.mxu2  ;;  %v863_v28 = vrot.slane %v862_v25, 1 }
 0x1a9   :  { %v659_v29 = vadd.f32 %v1817_v33, %v658_v27 }
 0x1aa   :  { %v864_v23 = vadd.f32 %v863_v28, %v862_v25 }
 0x1ab   :  { %v713_v30 = vmax.f32 %v659_v29, 0.0 }
 0x1ac   :  { %v1906_v31 = vsel %vm967_vm9, %v864_v23, %v966_v11 }
 0x1ad   :  { %v745_v32 = vpack.c.bf16 %v713_v30, %v713_v30  ;;  %v866_v34 = vsel %vm51_vm0, %v713_v30, 0.0 }
 0x1ae   :  { %v867_v35 = vadd.f32 %v866_v34, %v865_v56  ;;  %v1104_v36 = vadd.f32 %v1103_v15, %v866_v34 }
 0x1af   :  { %778 = vst.msk [vmem:[#allocation3 + $0x44] sm:$0xf] %vm760_vm2, %v745_v32 }
 0x1b0   :  { %v661_v37 = vpop.f32.mrf.mxu2  ;;  %v868_v24 = vrot.slane %v867_v35, 4 }
 0x1b1   :  { %v662_v38 = vadd.f32 %v1817_v33, %v661_v37 }
 0x1b2   :  { %v869_v45 = vadd.f32 %v868_v24, %v867_v35 }
 0x1b3   :  { %v714_v39 = vmax.f32 %v662_v38, 0.0  ;;  %v1540_v38 = vmov 0.0  }
 0x1b4   :  { %v870_v49 = vrot.slane %v869_v45, 2  ;;  %52 = vst.msk [vmem:[#allocation2] sm:$0xff] %vm51_vm0, %v1540_v38 }
 0x1b5   :  { %v746_v40 = vpack.c.bf16 %v714_v39, %v714_v39  ;;  %v874_v41 = vsel %vm51_vm0, %v714_v39, 0.0  ;;  %53 = vst.msk [vmem:[#allocation2 + $0x8] sm:$0xff] %vm51_vm0, %v1540_v38 }
 0x1b6   :  { %v1090_v42 = vadd.f32 %v1089_v26, %v874_v41  ;;  %v871_v54 = vadd.f32 %v870_v49, %v869_v45 }
 0x1b7   :  { %779 = vst.msk [vmem:[#allocation3 + $0x48] sm:$0xf] %vm760_vm2, %v746_v40 }
 0x1b8   :  { %v663_v43 = vpop.f32.mrf.mxu2  ;;  %v872_v50 = vrot.slane %v871_v54, 1 }
 0x1b9   :  { %v664_v44 = vadd.f32 %v1817_v33, %v663_v43 }
 0x1ba   :  { %v873_v4 = vadd.f32 %v872_v50, %v871_v54 }
 0x1bb   :  { %v715_v46 = vmax.f32 %v664_v44, 0.0 }
 0x1bd   :  { %v747_v47 = vpack.c.bf16 %v715_v46, %v715_v46  ;;  %v875_v48 = vsel %vm51_vm0, %v715_v46, 0.0 }
 0x1be   :  { %v876_v59 = vadd.f32 %v875_v48, %v874_v41  ;;  %v1105_v51 = vadd.f32 %v1104_v36, %v875_v48 }
 0x1bf   :  { %780 = vst.msk [vmem:[#allocation3 + $0x4c] sm:$0xf] %vm760_vm2, %v747_v47 }
 0x1c0   :  { %v877_v61 = vrot.slane %v876_v59, 4  ;;  %v666_v52 = vpop.f32.mrf.mxu2 }
 0x1c1   :  { %v667_v53 = vadd.f32 %v1817_v33, %v666_v52 }
 0x1c2   :  { %v878_v55 = vadd.f32 %v877_v61, %v876_v59 }
 0x1c3   :  { %v716_v57 = vmax.f32 %v667_v53, 0.0 }
 0x1c4   :  { %v879_v58 = vrot.slane %v878_v55, 2 }
 0x1c5   :  { %v748_v60 = vpack.c.bf16 %v716_v57, %v716_v57  ;;  %v883_v62 = vsel %vm51_vm0, %v716_v57, 0.0 }
 0x1c6   :  { %v880_v63 = vadd.f32 %v879_v58, %v878_v55  ;;  %v1918_v0 = vadd.f32 %v1090_v42, %v883_v62 }
 0x1c7   :  { %781 = vst.msk [vmem:[#allocation3 + $0x50] sm:$0xf] %vm760_vm2, %v748_v60 }
 0x1c8   :  { %v881_v1 = vrot.slane %v880_v63, 1  ;;  %v668_v2 = vpop.f32.mrf.mxu2 }
 0x1c9   :  { %v669_v3 = vadd.f32 %v1817_v33, %v668_v2 }
 0x1ca   :  { %v882_v5 = vadd.f32 %v881_v1, %v880_v63 }
 0x1cb   :  { %v717_v6 = vmax.f32 %v669_v3, 0.0 }
 0x1cc   :  { %v969_v7 = vsel %vm955_vm3, %v882_v5, %v873_v4  ;;  %v1421_v4 = vld [vmem:[%s2056_s8 + $0x18] sm:$0xff] }
 0x1cd   :  { %v749_v8 = vpack.c.bf16 %v717_v6, %v717_v6  ;;  %v884_v9 = vsel %vm51_vm0, %v717_v6, 0.0  ;;  %1028 = vmatpush.bf16.msrb.mxu3 %v1421_v4 }
 0x1ce   :  { %v885_v10 = vadd.f32 %v884_v9, %v883_v62  ;;  %v1924_v11 = vadd.f32 %v1105_v51, %v884_v9 }
 0x1cf   :  { %782 = vst.msk [vmem:[#allocation3 + $0x54] sm:$0xf] %vm760_vm2, %v749_v8 }
 0x1d0   :  { %v886_v12 = vrot.slane %v885_v10, 4  ;;  %v671_v13 = vpop.f32.mrf.mxu2 }
 0x1d1   :  { %v672_v14 = vadd.f32 %v1817_v33, %v671_v13 }
 0x1d2   :  { %v887_v15 = vadd.f32 %v886_v12, %v885_v10 }
 0x1d3   :  { %v718_v16 = vmax.f32 %v672_v14, 0.0 }
 0x1d4   :  { %v888_v17 = vrot.slane %v887_v15, 2 }
 0x1d5   :  { %v750_v18 = vpack.c.bf16 %v718_v16, %v718_v16  ;;  %v892_v52 = vsel %vm51_vm0, %v718_v16, 0.0 }
 0x1d6   :  { %v889_v19 = vadd.f32 %v888_v17, %v887_v15  ;;  %v1092_v63 = vadd.f32 %v1918_v0, %v892_v52 }
 0x1d7   :  { %783 = vst.msk [vmem:[#allocation3 + $0x58] sm:$0xf] %vm760_vm2, %v750_v18 }
 0x1d8   :  { %v890_v20 = vrot.slane %v889_v19, 1  ;;  %v673_v21 = vpop.f32.mrf.mxu2 }
 0x1d9   :  { %v674_v22 = vadd.f32 %v1817_v33, %v673_v21 }
 0x1da   :  { %v891_v56 = vadd.f32 %v890_v20, %v889_v19  ;;  %v1112_v19 = vld [vmem:[#allocation2] sm:$0xff] }
 0x1db   :  { %v719_v25 = vmax.f32 %v674_v22, 0.0 }
 0x1dc   :  { %v1931_v26 = vsel %vm957_vm4, %v891_v56, %v969_v7 }
 0x1dd   :  { %v751_v27 = vpack.c.bf16 %v719_v25, %v719_v25  ;;  %v893_v59 = vsel %vm51_vm0, %v719_v25, 0.0  ;;  %v1420_v25 = vld [vmem:[%s2056_s8 + $0x10] sm:$0xff] }
 0x1de   :  { %v894_v55 = vadd.f32 %v893_v59, %v892_v52  ;;  %v1107_v20 = vadd.f32 %v1924_v11, %v893_v59  ;;  %1029 = vmatpush.bf16.msrb.mxu3 %v1420_v25  ;;  %v1419_v11 = vld [vmem:[%s2056_s8 + $0x8] sm:$0xff] }
 0x1df   :  { %784 = vst.msk [vmem:[#allocation3 + $0x5c] sm:$0xf] %vm760_vm2, %v751_v27 }
 0x1e0   :  { %v676_v28 = vpop.f32.mrf.mxu2  ;;  %v895_v5 = vrot.slane %v894_v55, 4 }
 0x1e1   :  { %v677_v29 = vadd.f32 %v1817_v33, %v676_v28 }
 0x1e2   :  { %v896_v14 = vadd.f32 %v895_v5, %v894_v55  ;;  %1030 = vmatpush.bf16.msrb.mxu3 %v1419_v11  ;;  %v1429_v11 = vld [vmem:[%s2058_s10 + $0x8] sm:$0xff] }
 0x1e3   :  { %v720_v23 = vmax.f32 %v677_v29, 0.0 }
 0x1e4   :  { %v897_v27 = vrot.slane %v896_v14, 2 }
 0x1e5   :  { %v752_v30 = vpack.c.bf16 %v720_v23, %v720_v23  ;;  %v901_v57 = vsel %vm51_vm0, %v720_v23, 0.0 }
 0x1e6   :  { %v1093_v6 = vadd.f32 %v1092_v63, %v901_v57  ;;  %v898_v38 = vadd.f32 %v897_v27, %v896_v14 }
 0x1e7   :  { %785 = vst.msk [vmem:[#allocation3 + $0x60] sm:$0xf] %vm760_vm2, %v752_v30 }
 0x1e8   :  { %v678_v32 = vpop.f32.mrf.mxu2 }
 0x1e9   :  { %v679_v34 = vadd.f32 %v1817_v33, %v678_v32 }
 0x1eb   :  { %v721_v35 = vmax.f32 %v679_v34, 0.0 }
 0x1ed   :  { %v753_v36 = vpack.c.bf16 %v721_v35, %v721_v35  ;;  %v902_v61 = vsel %vm51_vm0, %v721_v35, 0.0 }
 0x1ee   :  { %v903_v58 = vadd.f32 %v902_v61, %v901_v57  ;;  %v1108_v28 = vadd.f32 %v1107_v20, %v902_v61 }
 0x1ef   :  { %786 = vst.msk [vmem:[#allocation3 + $0x64] sm:$0xf] %vm760_vm2, %v753_v36 }
 0x1f0   :  { %v681_v37 = vpop.f32.mrf.mxu2  ;;  %v904_v8 = vrot.slane %v903_v58, 4 }
 0x1f1   :  { %v682_v39 = vadd.f32 %v1817_v33, %v681_v37 }
 0x1f2   :  { %v905_v16 = vadd.f32 %v904_v8, %v903_v58 }
 0x1f3   :  { %v722_v40 = vmax.f32 %v682_v39, 0.0 }
 0x1f4   :  { %v906_v30 = vrot.slane %v905_v16, 2 }
 0x1f5   :  { %v754_v41 = vpack.c.bf16 %v722_v40, %v722_v40  ;;  %v910_v60 = vsel %vm51_vm0, %v722_v40, 0.0 }
 0x1f6   :  { %v1094_v10 = vadd.f32 %v1093_v6, %v910_v60  ;;  %v907_v40 = vadd.f32 %v906_v30, %v905_v16 }
 0x1f7   :  { %787 = vst.msk [vmem:[#allocation3 + $0x68] sm:$0xf] %vm760_vm2, %v754_v41 }
 0x1f8   :  { %v683_v24 = vpop.f32.mrf.mxu2  ;;  %v908_v59 = vrot.slane %v907_v40, 1 }
 0x1f9   :  { %v684_v42 = vadd.f32 %v1817_v33, %v683_v24 }
 0x1fa   :  { %v909_v55 = vadd.f32 %v908_v59, %v907_v40 }
 0x1fb   :  { %v723_v43 = vmax.f32 %v684_v42, 0.0  ;;  %v1113_v42 = vld [vmem:[#allocation2 + $0x8] sm:$0xff] }
 0x1fd   :  { %v755_v44 = vpack.c.bf16 %v723_v43, %v723_v43  ;;  %v911_v53 = vsel %vm51_vm0, %v723_v43, 0.0 }
 0x1fe   :  { %v912_v1 = vadd.f32 %v911_v53, %v910_v60  ;;  %v1109_v35 = vadd.f32 %v1108_v28, %v911_v53 }
 0x1ff   :  { %788 = vst.msk [vmem:[#allocation3 + $0x6c] sm:$0xf] %vm760_vm2, %v755_v44 }
 0x200   :  { %v686_v45 = vpop.f32.mrf.mxu2  ;;  %v913_v12 = vrot.slane %v912_v1, 4 }
 0x201   :  { %v687_v46 = vadd.f32 %v1817_v33, %v686_v45 }
 0x202   :  { %v914_v21 = vadd.f32 %v913_v12, %v912_v1  ;;  %v1423_v12 = vld [vmem:[%s2058_s10 + $0x8] sm:$0xff] }
 0x203   :  { %v724_v47 = vmax.f32 %v687_v46, 0.0  ;;  %1070 = vmatpush.bf16.msra.mxu0 %v1423_v12 }
 0x204   :  { %v915_v34 = vrot.slane %v914_v21, 2 }
 0x205   :  { %v756_v48 = vpack.c.bf16 %v724_v47, %v724_v47  ;;  %v919_v2 = vsel %vm51_vm0, %v724_v47, 0.0  ;;  %v899_v47 = vrot.slane %v898_v38, 1 }
 0x206   :  { %v1095_v15 = vadd.f32 %v1094_v10, %v919_v2  ;;  %v916_v43 = vadd.f32 %v915_v34, %v914_v21  ;;  %v1424_v10 = vld [vmem:[%s2056_s8] sm:$0xff] }
 0x207   :  { %789 = vst.msk [vmem:[#allocation3 + $0x70] sm:$0xf] %vm760_vm2, %v756_v48  ;;  %v900_v53 = vadd.f32 %v899_v47, %v898_v38  ;;  %v1428_v34 = vld [vmem:[%s2058_s10] sm:$0xff] }
 0x208   :  { %v688_v49 = vpop.f32.mrf.mxu2 }
 0x209   :  { %v689_v51 = vadd.f32 %v1817_v33, %v688_v49 }
 0x20b   :  { %v725_v54 = vmax.f32 %v689_v51, 0.0  ;;  %v917_v51 = vrot.slane %v916_v43, 1 }
 0x20d   :  { %v757_v62 = vpack.c.bf16 %v725_v54, %v725_v54  ;;  %v920_v50 = vsel %vm51_vm0, %v725_v54, 0.0  ;;  %v918_v57 = vadd.f32 %v917_v51, %v916_v43 }
 0x20e   :  { %v921_v3 = vadd.f32 %v920_v50, %v919_v2  ;;  %v1110_v39 = vadd.f32 %v1109_v35, %v920_v50  ;;  %v971_v50 = vsel %vm959_vm5, %v900_v53, %v1931_v26  ;;  %v1427_v26 = vld [vmem:[%s2056_s8 + $0x18] sm:$0xff] }
 0x20f   :  { %790 = vst.msk [vmem:[#allocation3 + $0x74] sm:$0xf] %vm760_vm2, %v757_v62  ;;  %v972_v63 = vsel %vm961_vm6, %v909_v55, %v971_v50  ;;  %v1463_v55 = vld [vmem:[%s2059_s11] ss:$0 sm:$0xff] }
 0x210   :  { %v691_v7 = vpop.f32.mrf.mxu2  ;;  %v922_v0 = vrot.slane %v921_v3, 4  ;;  %v973_v2 = vsel %vm963_vm7, %v918_v57, %v972_v63 }
 0x211   :  { %v692_v9 = vadd.f32 %v1817_v33, %v691_v7 }
 0x212   :  { %v923_v56 = vadd.f32 %v922_v0, %v921_v3  ;;  %v1422_v0 = vld [vmem:[%s2058_s10] sm:$0xff] }
 0x213   :  { %v726_v13 = vmax.f32 %v692_v9, 0.0  ;;  %v1426_v9 = vld [vmem:[%s2056_s8 + $0x10] sm:$0xff]  ;;  %1071 = vmatpush.bf16.msra.mxu0 %v1422_v0 }
 0x214   :  { %v924_v36 = vrot.slane %v923_v56, 2 }
 0x215   :  { %v758_v17 = vpack.c.bf16 %v726_v13, %v726_v13  ;;  %v928_v18 = vsel %vm51_vm0, %v726_v13, 0.0  ;;  %v54_v13 = vld [vmem:[%s2049_s1] sm:$0xff]  }
 0x216   :  { %v1096_v22 = vadd.f32 %v1095_v15, %v928_v18  ;;  %v925_v46 = vadd.f32 %v924_v36, %v923_v56  ;;  %v937_v14 = vunpack.c.l.bf16 %v54_v13  ;;  %v938_v15 = vunpack.c.h.bf16 %v54_v13  ;;  %v1460_v36 = vld [vmem:[%s2057_s9] ss:$0 sm:$0xff] }
 0x217   :  { %791 = vst.msk [vmem:[#allocation3 + $0x78] sm:$0xf] %vm760_vm2, %v758_v17  ;;  %1223 = vmatpush.bf16.msrb.mxu0 %v1429_v11 }
 0x218   :  { %v1114_v29 = vadd.f32 %v1112_v19, %v1096_v22  ;;  %v693_v23 = vpop.f32.mrf.mxu2  ;;  %v926_v52 = vrot.slane %v925_v46, 1  ;;  %v1431_v22 = vld [vmem:[%s2051_s3] sm:$0xff]  }
 0x219   :  { %v694_v32 = vadd.f32 %v1817_v33, %v693_v23  ;;  %v1418_v33 = vld [vmem:[%s2056_s8] sm:$0xff]  ;;  %v1432_v25 = vunpack.c.l.bf16 %v1431_v22  ;;  %v1433_v27 = vunpack.c.h.bf16 %v1431_v22 }
 0x21a   :  { %1116 = vst.msk [vmem:[#allocation2] sm:$0xff] %vm51_vm0, %v1114_v29  ;;  %1031 = vmatpush.bf16.msrb.mxu3 %v1418_v33  ;;  %v927_v60 = vadd.f32 %v926_v52, %v925_v46  ;;  %v1461_v33 = vld [vmem:[%s2057_s9] ss:$0 sm:$0xff] }
 0x21b   :  { %v727_v37 = vmax.f32 %v694_v32, 0.0  ;;  %1224 = vmatpush.bf16.msrb.mxu0 %v1428_v34 }
 0x21c   :  { %v974_v3 = vsel %vm965_vm8, %v927_v60, %v973_v2 }
 0x21d   :  { %v759_v41 = vpack.c.bf16 %v727_v37, %v727_v37  ;;  %v929_v24 = vsel %vm51_vm0, %v727_v37, 0.0 }
 0x21e   :  { %v930_v44 = vadd.f32 %v929_v24, %v928_v18  ;;  %v1111_v45 = vadd.f32 %v1110_v39, %v929_v24  ;;  %1181 = vmatpush.bf16.msra.mxu3 %v1427_v26 }
 0x21f   :  { %792 = vst.msk [vmem:[#allocation3 + $0x7c] sm:$0xf] %vm760_vm2, %v759_v41 }
 0x220   :  { %v931_v48 = vrot.slane %v930_v44, 4  ;;  %v1115_v49 = vadd.f32 %v1113_v42, %v1111_v45  ;;  %1247 = dma.vmem_to_hbm [thread:$0]  %s1240_s19, 2048, %s1242_s17, [#allocation4], %s1543_s20, %s1543_s20, %s1544_s21  }
 0x221   :  { %v1123_v7 = vld [vmem:[#allocation2] sm:$0xff] }
 0x222   :  { %v932_v61 = vadd.f32 %v931_v48, %v930_v44  ;;  %1117 = vst.msk [vmem:[#allocation2 + $0x8] sm:$0xff] %vm51_vm0, %v1115_v49  ;;  %1182 = vmatpush.bf16.msra.mxu3 %v1426_v9  ;;  %v1462_v49 = vld [vmem:[%s2059_s11] ss:$0 sm:$0xff] }
 0x224   :  { %v933_v54 = vrot.slane %v932_v61, 2 }
 0x226   :  { %v934_v58 = vadd.f32 %v933_v54, %v932_v61 }
 0x228   :  { %v935_v62 = vrot.slane %v934_v58, 1 }
 0x229   :  { %v1124_v6 = vld [vmem:[#allocation2 + $0x8] sm:$0xff] }
 0x22a   :  { %v936_v1 = vadd.f32 %v935_v62, %v934_v58  ;;  %v1454_v8 = vpack.i.bf16 %v1124_v6, %v1123_v7 }
 0x22c   :  { %v975_v4 = vsel %vm967_vm9, %v936_v1, %v974_v3 }
 0x22d   :  { %v1449_v5 = vpack.i.bf16 %v975_v4, %v1906_v31  ;;  %v1425_v31 = vld [vmem:[%s2056_s8 + $0x8] sm:$0xff]  ;;  %s1265_s8 = sshll.u32 %s1548_s13, 4  ;;  %s1266_s8 = int_to_ptr.vmem [resolvable:$true] %s1265_s8 }
 0x22e   :  { %1183 = vmatpush.bf16.msra.mxu3 %v1425_v31 }
 0x22f   :  { %1450 = vrot.lane.b32.xlu0 %v1449_v5, %s1541_s16 }
 0x232   :  { %1184 = vmatpush.bf16.msra.mxu3 %v1424_v10 }
 0x237   :  { %1455 = vrot.lane.b32.xlu0 %v1454_v8, %s1541_s16 }
 0x2a1   :  { %v1451_v16 = vpop.permute.xlu0 %1450 }
 0x2a2   :  { %v1453_v17 = vunpack.i.h.bf16 %v1451_v16  ;;  %v1452_v18 = vunpack.i.l.bf16 %v1451_v16 }
 0x2a4   :  { %v983_v19 = vsel %vm51_vm0, %v938_v15, %v1453_v17  ;;  %v982_v20 = vsel %vm51_vm0, %v937_v14, %v1452_v18 }
 0x2a5   :  { %v984_v21 = vpack.c.bf16 %v983_v19, %v982_v20 }
 0x2a7   :  { %1373 = vmatmul.msk.bf16.vlgmr.msrb.gmra.mxu3 %vm353_vm1, %v984_v21 }
 0x2a9   :  { %v1456_v56 = vpop.permute.xlu0 %1455 }
 0x2aa   :  { %v1458_v28 = vunpack.i.h.bf16 %v1456_v56  ;;  %v1457_v29 = vunpack.i.l.bf16 %v1456_v56 }
 0x2ac   :  { %v1136_v23 = vsel %vm51_vm0, %v1433_v27, %v1458_v28  ;;  %v1135_v30 = vsel %vm51_vm0, %v1432_v25, %v1457_v29 }
 0x2ad   :  { %v1137_v32 = vpack.c.bf16 %v1136_v23, %v1135_v30 }
 0x2b7   :  { %1399 = vmatmul.msk.bf16.vlgmr.msra.gmra.mxu3 %vm353_vm1, %v1137_v32 }
 0x32a   :  { %v1033_v35 = vpop.f32.mrf.mxu3 }
 0x32b   :  { %v1034_v37 = vadd.f32 %v1460_v36, %v1033_v35 }
 0x32d   :  { %v1038_v40 = vmax.f32 %v1034_v37, 0.0 }
 0x332   :  { %v1035_v38 = vpop.f32.mrf.mxu3 }
 0x333   :  { %v1036_v39 = vadd.f32 %v1460_v36, %v1035_v38 }
 0x335   :  { %v1039_v41 = vmax.f32 %v1036_v39, 0.0 }
 0x337   :  { %v1040_v24 = vpack.c.bf16 %v1039_v41, %v1038_v40 }
 0x339   :  { %1382 = vmatmul.msk.bf16.vlgmr.msra.gmra.mxu0 %vm51_vm0, %v1040_v24 }
 0x33a   :  { %v1186_v42 = vpop.f32.mrf.mxu3 }
 0x33b   :  { %v1187_v43 = vadd.f32 %v1461_v33, %v1186_v42 }
 0x33d   :  { %v1191_v46 = vmax.f32 %v1187_v43, 0.0 }
 0x342   :  { %v1188_v44 = vpop.f32.mrf.mxu3 }
 0x343   :  { %v1189_v45 = vadd.f32 %v1461_v33, %v1188_v44 }
 0x345   :  { %v1192_v47 = vmax.f32 %v1189_v45, 0.0 }
 0x347   :  { %v1193_v48 = vpack.c.bf16 %v1192_v47, %v1191_v46 }
 0x349   :  { %1408 = vmatmul.msk.bf16.vlgmr.msrb.gmra.mxu0 %vm51_vm0, %v1193_v48 }
 0x3b6   :  { %v1073_v59 = vpop.f32.mrf.mxu0 }
 0x3b7   :  { %v1074_v51 = vadd.f32 %v1462_v49, %v1073_v59 }
 0x3b9   :  { %v1078_v61 = vmax.f32 %v1074_v51, 0.0 }
 0x3bb   :  { %1080 = vst.msk [vmem:[#allocation5] sm:$0xff] %vm51_vm0, %v1078_v61 }
 0x3be   :  { %v1075_v52 = vpop.f32.mrf.mxu0 }
 0x3bf   :  { %v1076_v53 = vadd.f32 %v1462_v49, %v1075_v52 }
 0x3c1   :  { %v1079_v54 = vmax.f32 %v1076_v53, 0.0 }
 0x3c3   :  { %1081 = vst.msk [vmem:[#allocation5 + $0x8] sm:$0xff] %vm51_vm0, %v1079_v54 }
 0x3c4   :  { %1260 = dma.vmem_to_hbm [thread:$0]  %s1253_s6, 256, %s1255_s24, [#allocation6], %s1546_s2, %s1546_s2, %s1547_s7  }
 0x3c6   :  { %v1226_v57 = vpop.f32.mrf.mxu0 }
 0x3c7   :  { %v1227_v58 = vadd.f32 %v1463_v55, %v1226_v57 }
 0x3c9   :  { %v1231_v60 = vmax.f32 %v1227_v58, 0.0 }
 0x3cb   :  { %1233 = vst.msk [vmem:[#allocation7] sm:$0xff] %vm51_vm0, %v1231_v60 }
 0x3ce   :  { %v1228_v62 = vpop.f32.mrf.mxu0 }
 0x3cf   :  { %v1229_v50 = vadd.f32 %v1463_v55, %v1228_v62 }
 0x3d1   :  { %v1232_v63 = vmax.f32 %v1229_v50, 0.0 }
 0x3d3   :  { %1234 = vst.msk [vmem:[#allocation7 + $0x8] sm:$0xff] %vm51_vm0, %v1232_v63 }
 0x3d4   :  { %1273 = dma.vmem_to_hbm [thread:$0]  %s1266_s8, 256, %s1268_s27, [#allocation6], %s1546_s2, %s1546_s2, %s1547_s7  }
 0x3d5   :  { %1536 = dma.done.wait [#allocation4], 2048  }
 0x3d6   :  { %1537 = vsyncadd [#allocation4], 4294965248 }
 0x3d7   :  { %1538 = dma.done.wait [#allocation6], 512  }
 0x3d8   :  { %1539 = vsyncadd [#allocation6], 4294966784 }
 0x3d9   :  { %1286 = vsyncpa [#allocation4], 1 }
 0x3da   :  { %1287 = vsyncpa [#allocation6], 1 }

</bundles_post_ra>
